<compile_context>
chip_gen: v6e
topology: v6e:2x2x1
jax: 0.10.0
libtpu: 0.0.40
codegen_flags: <defaults>
</compile_context>

<pallas_src>
import functools
import math

import jax
import jax.numpy as jnp
from jax import lax
from jax.experimental import pallas as pl
from jax.experimental.pallas import tpu as pltpu

# ---------------------------------------------------------------------------
# Config (synthetic replacement for torch.load(config_GPU.pth))
# ---------------------------------------------------------------------------
BLOCK_SIZE = 8      # block_size (== T for the test input)
N_EMBD     = 32     # n_embd
NUM_HEADS  = 4
HEAD_SIZE  = N_EMBD // NUM_HEADS
DROPOUT    = 0.0    # eval mode

NEG_INF = -1e30     # finite large-negative mask value (NaN-safe)


# ---------------------------------------------------------------------------
# Fused kernel: per-head QKV -> causal softmax -> per-head partial projection
# ---------------------------------------------------------------------------
def fused_mha_kernel(x_ref, wq_ref, wk_ref, wv_ref, wp_ref, bp_ref, o_ref,
                     *, num_heads):
    # x_ref:  (B, T, C)  full batch, resident for the single grid step
    # wq/wk/wv_ref: (H, C, hs)  per-head pre-transposed weights (resident)
    # wp_ref: (C, C)     pre-transposed output projection (in, out)
    # bp_ref: (1, C)     projection bias
    # o_ref:  (B, T, C)
    B, T, C = x_ref.shape
    hs = C // num_heads
    scale = C ** (-0.5)                            # matches PyTorch: C == n_embd

    # causal (lower-triangular) mask, built once, reused for every (b, h)
    row = lax.broadcasted_iota(jnp.int32, (T, T), 0)
    col = lax.broadcasted_iota(jnp.int32, (T, T), 1)
    causal = col <= row

    # hoisted bias broadcast (JAX does not CSE broadcast_in_dim inside loops)
    bias = jnp.zeros((T, C), jnp.float32) + bp_ref[...]

    for b in range(B):                             # tiny static unroll (B = 2)
        x = x_ref[b]                               # (T, C) leading-dim select
        y = bias                                   # (T, C) f32 accumulator
        for h in range(num_heads):                 # static unroll (H = 4)
            # per-head q/k/v straight from their own MXU matmul — no lane
            # slicing of a packed qkv tensor, no relayouts.
            q = jnp.dot(x, wq_ref[h], preferred_element_type=jnp.float32)
            k = jnp.dot(x, wk_ref[h], preferred_element_type=jnp.float32)
            v = jnp.dot(x, wv_ref[h], preferred_element_type=jnp.float32)

            # contract head_size axis directly (no explicit k transpose)
            wei = lax.dot_general(
                q, k, (((1,), (1,)), ((), ())),
                preferred_element_type=jnp.float32) * scale       # (T, T)
            wei = jnp.where(causal, wei, NEG_INF)

            # exact softmax over keys
            wei = wei - jnp.max(wei, axis=-1, keepdims=True)
            wei = jnp.exp(wei)
            wei = wei / jnp.sum(wei, axis=-1, keepdims=True)

            av = jnp.dot(wei, v, preferred_element_type=jnp.float32)  # (T, hs)

            # per-head partial projection: sublane slice of Wp (free for f32,
            # hs = 8), accumulated in f32 — replaces concat + one big matmul.
            y = y + jnp.dot(av, wp_ref[h * hs:(h + 1) * hs, :],
                            preferred_element_type=jnp.float32)

        # dropout(p=0.0) / eval: identity
        o_ref[b] = y.astype(o_ref.dtype)


# ---------------------------------------------------------------------------
# One-time host-side weight repack (hoisted out of the forward path)
# ---------------------------------------------------------------------------
def prepare_params(params):
    H, hs, C = params["wq"].shape
    pack = lambda w: jnp.transpose(w, (0, 2, 1))   # (H, hs, C) -> (H, C, hs)
    return dict(
        wq_t=pack(params["wq"]),
        wk_t=pack(params["wk"]),
        wv_t=pack(params["wv"]),
        wp_t=params["w_proj"].T,                   # (C_in, C_out)
        bp=params["b_proj"].reshape(1, C),
    )


# ---------------------------------------------------------------------------
# Wrapper: single pallas_call, single grid step
# ---------------------------------------------------------------------------
def multi_head_attention(x, packed, *, num_heads=NUM_HEADS):
    """Pallas implementation of MultiHeadAttention.forward (eval mode)."""
    B, T, C = x.shape
    hs = C // num_heads
    kernel = functools.partial(fused_mha_kernel, num_heads=num_heads)

    cost = pl.CostEstimate(
        flops=(2 * B * T * C * 3 * C            # QKV
               + 4 * B * num_heads * T * T * hs  # scores + wei@v
               + 2 * B * T * C * C),             # output projection
        transcendentals=B * num_heads * T * T,   # exp in softmax
        bytes_accessed=4 * (2 * B * T * C + 3 * C * C + C * C + C),
    )

    return pl.pallas_call(
        kernel,
        out_shape=jax.ShapeDtypeStruct((B, T, C), x.dtype),
        grid_spec=pltpu.PrefetchScalarGridSpec(
            num_scalar_prefetch=0,
            grid=(1,),                                           # one step
            in_specs=[
                pl.BlockSpec((B, T, C), lambda i: (0, 0, 0)),            # x
                pl.BlockSpec((num_heads, C, hs), lambda i: (0, 0, 0)),   # Wq
                pl.BlockSpec((num_heads, C, hs), lambda i: (0, 0, 0)),   # Wk
                pl.BlockSpec((num_heads, C, hs), lambda i: (0, 0, 0)),   # Wv
                pl.BlockSpec((C, C), lambda i: (0, 0)),                  # Wp^T
                pl.BlockSpec((1, C), lambda i: (0, 0)),                  # bias
            ],
            out_specs=pl.BlockSpec((B, T, C), lambda i: (0, 0, 0)),
        ),
        compiler_params=pltpu.CompilerParams(
            dimension_semantics=("arbitrary",)),
        cost_estimate=cost,
    )(x, packed["wq_t"], packed["wk_t"], packed["wv_t"],
      packed["wp_t"], packed["bp"])


# ---------------------------------------------------------------------------
# Deterministic parameter init (matches nn.Linear shapes / uniform init style)
# ---------------------------------------------------------------------------
def init_params(key, n_embd, num_heads, head_size):
    keys = jax.random.split(key, 5)
    lim_in = 1.0 / math.sqrt(n_embd)

    def unif(k, shape, lim):
        return jax.random.uniform(k, shape, jnp.float32, minval=-lim, maxval=lim)

    wq = unif(keys[0], (num_heads, head_size, n_embd), lim_in)
    wk = unif(keys[1], (num_heads, head_size, n_embd), lim_in)
    wv = unif(keys[2], (num_heads, head_size, n_embd), lim_in)
    w_proj = unif(keys[3], (n_embd, n_embd), lim_in)
    b_proj = unif(keys[4], (n_embd,), lim_in)
    return dict(wq=wq, wk=wk, wv=wv, w_proj=w_proj, b_proj=b_proj)


# ---------------------------------------------------------------------------
# Pure-JAX reference (mirrors the PyTorch code) for a correctness check
# ---------------------------------------------------------------------------
def reference_forward(x, params):
    B, T, C = x.shape
    outs = []
    H = params["wq"].shape[0]
    for h in range(H):
        q = x @ params["wq"][h].T
        k = x @ params["wk"][h].T
        v = x @ params["wv"][h].T
        wei = (q @ jnp.swapaxes(k, -2, -1)) * (C ** -0.5)
        tril = jnp.tril(jnp.ones((T, T)))
        wei = jnp.where(tril == 0, -jnp.inf, wei)
        wei = jax.nn.softmax(wei, axis=-1)
        outs.append(wei @ v)
    cat = jnp.concatenate(outs, axis=-1)
    return cat @ params["w_proj"].T + params["b_proj"]


if __name__ == "__main__":
    key = jax.random.PRNGKey(0)
    kx, kp = jax.random.split(key)

    B, T = 2, BLOCK_SIZE
    x = jax.random.normal(kx, (B, T, N_EMBD), jnp.float32)
    params = init_params(kp, N_EMBD, NUM_HEADS, HEAD_SIZE)
    packed = prepare_params(params)        # one-time repack, outside forward

    out = multi_head_attention(x, packed)
    out = jax.block_until_ready(out)

    ref = reference_forward(x, params)
    assert out.shape == (B, T, N_EMBD)
    assert jnp.allclose(out, ref, atol=1e-4, rtol=1e-4), "mismatch vs reference"

    print("KERNEL_OK")
</pallas_src>

<mosaic_0001>
module attributes {stable_mosaic.version = 11 : i64} {
  func.func @fused_mha_kernel(%arg0: i32, %arg1: memref<2x8x32xf32, #tpu.memory_space<vmem>>, %arg2: memref<4x32x8xf32, #tpu.memory_space<vmem>>, %arg3: memref<4x32x8xf32, #tpu.memory_space<vmem>>, %arg4: memref<4x32x8xf32, #tpu.memory_space<vmem>>, %arg5: memref<32x32xf32, #tpu.memory_space<vmem>>, %arg6: memref<1x32xf32, #tpu.memory_space<vmem>>, %arg7: memref<2x8x32xf32, #tpu.memory_space<vmem>>) attributes {dimension_semantics = [#tpu.dimension_semantics<arbitrary>], iteration_bounds = array<i64: 1>, scalar_prefetch = 0 : i64, scratch_operands = 0 : i64, tpu.core_type = #tpu.core_type<tc>, window_params = [{pipeline_mode = #tpu.pipeline_mode<synchronous>, transform_indices = @transform_0, window_bounds = array<i64: 2, 8, 32>}, {pipeline_mode = #tpu.pipeline_mode<synchronous>, transform_indices = @transform_1, window_bounds = array<i64: 4, 32, 8>}, {pipeline_mode = #tpu.pipeline_mode<synchronous>, transform_indices = @transform_2, window_bounds = array<i64: 4, 32, 8>}, {pipeline_mode = #tpu.pipeline_mode<synchronous>, transform_indices = @transform_3, window_bounds = array<i64: 4, 32, 8>}, {pipeline_mode = #tpu.pipeline_mode<synchronous>, transform_indices = @transform_4, window_bounds = array<i64: 32, 32>}, {pipeline_mode = #tpu.pipeline_mode<synchronous>, transform_indices = @transform_5, window_bounds = array<i64: 1, 32>}, {pipeline_mode = #tpu.pipeline_mode<synchronous>, transform_indices = @transform_6, window_bounds = array<i64: 2, 8, 32>}]} {
    %0 = tpu.iota {dimensions = array<i32: 0>} : vector<8x8xi32>
    %1 = tpu.iota {dimensions = array<i32: 1>} : vector<8x8xi32>
    %2 = arith.cmpi sle, %1, %0 : vector<8x8xi32>
    %cst = arith.constant 0.000000e+00 : f32
    %3 = vector.broadcast %cst : f32 to vector<8x32xf32>
    %c0 = arith.constant 0 : index
    %c0_0 = arith.constant 0 : index
    %4 = vector.load %arg6[%c0, %c0_0] : memref<1x32xf32, #tpu.memory_space<vmem>>, vector<1x32xf32>
    %5 = vector.broadcast %4 : vector<1x32xf32> to vector<8x32xf32>
    %6 = arith.addf %3, %5 : vector<8x32xf32>
    %c0_1 = arith.constant 0 : index
    %c0_2 = arith.constant 0 : index
    %c0_3 = arith.constant 0 : index
    %7 = vector.load %arg1[%c0_1, %c0_2, %c0_3] : memref<2x8x32xf32, #tpu.memory_space<vmem>>, vector<1x8x32xf32>
    %8 = vector.shape_cast %7 : vector<1x8x32xf32> to vector<8x32xf32>
    %c0_4 = arith.constant 0 : index
    %c0_5 = arith.constant 0 : index
    %c0_6 = arith.constant 0 : index
    %9 = vector.load %arg2[%c0_4, %c0_5, %c0_6] : memref<4x32x8xf32, #tpu.memory_space<vmem>>, vector<1x32x8xf32>
    %10 = vector.shape_cast %9 : vector<1x32x8xf32> to vector<32x8xf32>
    %cst_7 = arith.constant dense<0.000000e+00> : vector<8x8xf32>
    %11 = tpu.matmul %8, %10, %cst_7 {dimension_numbers = #tpu.dot_dimension_numbers<[1], [0], [0], [1], [0, 0, 1, 1], [], []>} : vector<8x32xf32>, vector<32x8xf32>, vector<8x8xf32> -> vector<8x8xf32>
    %c0_8 = arith.constant 0 : index
    %c0_9 = arith.constant 0 : index
    %c0_10 = arith.constant 0 : index
    %12 = vector.load %arg3[%c0_8, %c0_9, %c0_10] : memref<4x32x8xf32, #tpu.memory_space<vmem>>, vector<1x32x8xf32>
    %13 = vector.shape_cast %12 : vector<1x32x8xf32> to vector<32x8xf32>
    %cst_11 = arith.constant dense<0.000000e+00> : vector<8x8xf32>
    %14 = tpu.matmul %8, %13, %cst_11 {dimension_numbers = #tpu.dot_dimension_numbers<[1], [0], [0], [1], [0, 0, 1, 1], [], []>} : vector<8x32xf32>, vector<32x8xf32>, vector<8x8xf32> -> vector<8x8xf32>
    %c0_12 = arith.constant 0 : index
    %c0_13 = arith.constant 0 : index
    %c0_14 = arith.constant 0 : index
    %15 = vector.load %arg4[%c0_12, %c0_13, %c0_14] : memref<4x32x8xf32, #tpu.memory_space<vmem>>, vector<1x32x8xf32>
    %16 = vector.shape_cast %15 : vector<1x32x8xf32> to vector<32x8xf32>
    %cst_15 = arith.constant dense<0.000000e+00> : vector<8x8xf32>
    %17 = tpu.matmul %8, %16, %cst_15 {dimension_numbers = #tpu.dot_dimension_numbers<[1], [0], [0], [1], [0, 0, 1, 1], [], []>} : vector<8x32xf32>, vector<32x8xf32>, vector<8x8xf32> -> vector<8x8xf32>
    %cst_16 = arith.constant dense<0.000000e+00> : vector<8x8xf32>
    %18 = tpu.matmul %11, %14, %cst_16 {dimension_numbers = #tpu.dot_dimension_numbers<[1], [1], [0], [0], [0, 0, 1, 0], [], []>} : vector<8x8xf32>, vector<8x8xf32>, vector<8x8xf32> -> vector<8x8xf32>
    %cst_17 = arith.constant 0.176776692 : f32
    %19 = vector.broadcast %cst_17 : f32 to vector<8x8xf32>
    %20 = arith.mulf %18, %19 : vector<8x8xf32>
    %cst_18 = arith.constant -1.000000e+30 : f32
    %21 = vector.broadcast %cst_18 : f32 to vector<8x8xf32>
    %22 = arith.select %2, %20, %21 : vector<8x8xi1>, vector<8x8xf32>
    %cst_19 = arith.constant dense<0xFF800000> : vector<8xf32>
    %23 = vector.multi_reduction <maximumf>, %22, %cst_19 [1] : vector<8x8xf32> to vector<8xf32>
    %24 = vector.shape_cast %23 : vector<8xf32> to vector<8x1xf32>
    %25 = vector.broadcast %24 : vector<8x1xf32> to vector<8x8xf32>
    %26 = arith.subf %22, %25 : vector<8x8xf32>
    %27 = math.exp %26 : vector<8x8xf32>
    %cst_20 = arith.constant dense<0.000000e+00> : vector<8xf32>
    %28 = vector.multi_reduction <add>, %27, %cst_20 [1] : vector<8x8xf32> to vector<8xf32>
    %29 = vector.shape_cast %28 : vector<8xf32> to vector<8x1xf32>
    %30 = vector.broadcast %29 : vector<8x1xf32> to vector<8x8xf32>
    %31 = arith.divf %27, %30 : vector<8x8xf32>
    %cst_21 = arith.constant dense<0.000000e+00> : vector<8x8xf32>
    %32 = tpu.matmul %31, %17, %cst_21 {dimension_numbers = #tpu.dot_dimension_numbers<[1], [0], [0], [1], [0, 0, 1, 1], [], []>} : vector<8x8xf32>, vector<8x8xf32>, vector<8x8xf32> -> vector<8x8xf32>
    %c0_22 = arith.constant 0 : index
    %c0_23 = arith.constant 0 : index
    %33 = vector.load %arg5[%c0_22, %c0_23] : memref<32x32xf32, #tpu.memory_space<vmem>>, vector<8x32xf32>
    %cst_24 = arith.constant dense<0.000000e+00> : vector<8x32xf32>
    %34 = tpu.matmul %32, %33, %cst_24 {dimension_numbers = #tpu.dot_dimension_numbers<[1], [0], [0], [1], [0, 0, 1, 1], [], []>} : vector<8x8xf32>, vector<8x32xf32>, vector<8x32xf32> -> vector<8x32xf32>
    %35 = arith.addf %6, %34 : vector<8x32xf32>
    %c1 = arith.constant 1 : index
    %c0_25 = arith.constant 0 : index
    %c0_26 = arith.constant 0 : index
    %36 = vector.load %arg2[%c1, %c0_25, %c0_26] : memref<4x32x8xf32, #tpu.memory_space<vmem>>, vector<1x32x8xf32>
    %37 = vector.shape_cast %36 : vector<1x32x8xf32> to vector<32x8xf32>
    %cst_27 = arith.constant dense<0.000000e+00> : vector<8x8xf32>
    %38 = tpu.matmul %8, %37, %cst_27 {dimension_numbers = #tpu.dot_dimension_numbers<[1], [0], [0], [1], [0, 0, 1, 1], [], []>} : vector<8x32xf32>, vector<32x8xf32>, vector<8x8xf32> -> vector<8x8xf32>
    %c1_28 = arith.constant 1 : index
    %c0_29 = arith.constant 0 : index
    %c0_30 = arith.constant 0 : index
    %39 = vector.load %arg3[%c1_28, %c0_29, %c0_30] : memref<4x32x8xf32, #tpu.memory_space<vmem>>, vector<1x32x8xf32>
    %40 = vector.shape_cast %39 : vector<1x32x8xf32> to vector<32x8xf32>
    %cst_31 = arith.constant dense<0.000000e+00> : vector<8x8xf32>
    %41 = tpu.matmul %8, %40, %cst_31 {dimension_numbers = #tpu.dot_dimension_numbers<[1], [0], [0], [1], [0, 0, 1, 1], [], []>} : vector<8x32xf32>, vector<32x8xf32>, vector<8x8xf32> -> vector<8x8xf32>
    %c1_32 = arith.constant 1 : index
    %c0_33 = arith.constant 0 : index
    %c0_34 = arith.constant 0 : index
    %42 = vector.load %arg4[%c1_32, %c0_33, %c0_34] : memref<4x32x8xf32, #tpu.memory_space<vmem>>, vector<1x32x8xf32>
    %43 = vector.shape_cast %42 : vector<1x32x8xf32> to vector<32x8xf32>
    %cst_35 = arith.constant dense<0.000000e+00> : vector<8x8xf32>
    %44 = tpu.matmul %8, %43, %cst_35 {dimension_numbers = #tpu.dot_dimension_numbers<[1], [0], [0], [1], [0, 0, 1, 1], [], []>} : vector<8x32xf32>, vector<32x8xf32>, vector<8x8xf32> -> vector<8x8xf32>
    %cst_36 = arith.constant dense<0.000000e+00> : vector<8x8xf32>
    %45 = tpu.matmul %38, %41, %cst_36 {dimension_numbers = #tpu.dot_dimension_numbers<[1], [1], [0], [0], [0, 0, 1, 0], [], []>} : vector<8x8xf32>, vector<8x8xf32>, vector<8x8xf32> -> vector<8x8xf32>
    %cst_37 = arith.constant 0.176776692 : f32
    %46 = vector.broadcast %cst_37 : f32 to vector<8x8xf32>
    %47 = arith.mulf %45, %46 : vector<8x8xf32>
    %cst_38 = arith.constant -1.000000e+30 : f32
    %48 = vector.broadcast %cst_38 : f32 to vector<8x8xf32>
    %49 = arith.select %2, %47, %48 : vector<8x8xi1>, vector<8x8xf32>
    %cst_39 = arith.constant dense<0xFF800000> : vector<8xf32>
    %50 = vector.multi_reduction <maximumf>, %49, %cst_39 [1] : vector<8x8xf32> to vector<8xf32>
    %51 = vector.shape_cast %50 : vector<8xf32> to vector<8x1xf32>
    %52 = vector.broadcast %51 : vector<8x1xf32> to vector<8x8xf32>
    %53 = arith.subf %49, %52 : vector<8x8xf32>
    %54 = math.exp %53 : vector<8x8xf32>
    %cst_40 = arith.constant dense<0.000000e+00> : vector<8xf32>
    %55 = vector.multi_reduction <add>, %54, %cst_40 [1] : vector<8x8xf32> to vector<8xf32>
    %56 = vector.shape_cast %55 : vector<8xf32> to vector<8x1xf32>
    %57 = vector.broadcast %56 : vector<8x1xf32> to vector<8x8xf32>
    %58 = arith.divf %54, %57 : vector<8x8xf32>
    %cst_41 = arith.constant dense<0.000000e+00> : vector<8x8xf32>
    %59 = tpu.matmul %58, %44, %cst_41 {dimension_numbers = #tpu.dot_dimension_numbers<[1], [0], [0], [1], [0, 0, 1, 1], [], []>} : vector<8x8xf32>, vector<8x8xf32>, vector<8x8xf32> -> vector<8x8xf32>
    %c8 = arith.constant 8 : index
    %c0_42 = arith.constant 0 : index
    %60 = vector.load %arg5[%c8, %c0_42] : memref<32x32xf32, #tpu.memory_space<vmem>>, vector<8x32xf32>
    %cst_43 = arith.constant dense<0.000000e+00> : vector<8x32xf32>
    %61 = tpu.matmul %59, %60, %cst_43 {dimension_numbers = #tpu.dot_dimension_numbers<[1], [0], [0], [1], [0, 0, 1, 1], [], []>} : vector<8x8xf32>, vector<8x32xf32>, vector<8x32xf32> -> vector<8x32xf32>
    %62 = arith.addf %35, %61 : vector<8x32xf32>
    %c2 = arith.constant 2 : index
    %c0_44 = arith.constant 0 : index
    %c0_45 = arith.constant 0 : index
    %63 = vector.load %arg2[%c2, %c0_44, %c0_45] : memref<4x32x8xf32, #tpu.memory_space<vmem>>, vector<1x32x8xf32>
    %64 = vector.shape_cast %63 : vector<1x32x8xf32> to vector<32x8xf32>
    %cst_46 = arith.constant dense<0.000000e+00> : vector<8x8xf32>
    %65 = tpu.matmul %8, %64, %cst_46 {dimension_numbers = #tpu.dot_dimension_numbers<[1], [0], [0], [1], [0, 0, 1, 1], [], []>} : vector<8x32xf32>, vector<32x8xf32>, vector<8x8xf32> -> vector<8x8xf32>
    %c2_47 = arith.constant 2 : index
    %c0_48 = arith.constant 0 : index
    %c0_49 = arith.constant 0 : index
    %66 = vector.load %arg3[%c2_47, %c0_48, %c0_49] : memref<4x32x8xf32, #tpu.memory_space<vmem>>, vector<1x32x8xf32>
    %67 = vector.shape_cast %66 : vector<1x32x8xf32> to vector<32x8xf32>
    %cst_50 = arith.constant dense<0.000000e+00> : vector<8x8xf32>
    %68 = tpu.matmul %8, %67, %cst_50 {dimension_numbers = #tpu.dot_dimension_numbers<[1], [0], [0], [1], [0, 0, 1, 1], [], []>} : vector<8x32xf32>, vector<32x8xf32>, vector<8x8xf32> -> vector<8x8xf32>
    %c2_51 = arith.constant 2 : index
    %c0_52 = arith.constant 0 : index
    %c0_53 = arith.constant 0 : index
    %69 = vector.load %arg4[%c2_51, %c0_52, %c0_53] : memref<4x32x8xf32, #tpu.memory_space<vmem>>, vector<1x32x8xf32>
    %70 = vector.shape_cast %69 : vector<1x32x8xf32> to vector<32x8xf32>
    %cst_54 = arith.constant dense<0.000000e+00> : vector<8x8xf32>
    %71 = tpu.matmul %8, %70, %cst_54 {dimension_numbers = #tpu.dot_dimension_numbers<[1], [0], [0], [1], [0, 0, 1, 1], [], []>} : vector<8x32xf32>, vector<32x8xf32>, vector<8x8xf32> -> vector<8x8xf32>
    %cst_55 = arith.constant dense<0.000000e+00> : vector<8x8xf32>
    %72 = tpu.matmul %65, %68, %cst_55 {dimension_numbers = #tpu.dot_dimension_numbers<[1], [1], [0], [0], [0, 0, 1, 0], [], []>} : vector<8x8xf32>, vector<8x8xf32>, vector<8x8xf32> -> vector<8x8xf32>
    %cst_56 = arith.constant 0.176776692 : f32
    %73 = vector.broadcast %cst_56 : f32 to vector<8x8xf32>
    %74 = arith.mulf %72, %73 : vector<8x8xf32>
    %cst_57 = arith.constant -1.000000e+30 : f32
    %75 = vector.broadcast %cst_57 : f32 to vector<8x8xf32>
    %76 = arith.select %2, %74, %75 : vector<8x8xi1>, vector<8x8xf32>
    %cst_58 = arith.constant dense<0xFF800000> : vector<8xf32>
    %77 = vector.multi_reduction <maximumf>, %76, %cst_58 [1] : vector<8x8xf32> to vector<8xf32>
    %78 = vector.shape_cast %77 : vector<8xf32> to vector<8x1xf32>
    %79 = vector.broadcast %78 : vector<8x1xf32> to vector<8x8xf32>
    %80 = arith.subf %76, %79 : vector<8x8xf32>
    %81 = math.exp %80 : vector<8x8xf32>
    %cst_59 = arith.constant dense<0.000000e+00> : vector<8xf32>
    %82 = vector.multi_reduction <add>, %81, %cst_59 [1] : vector<8x8xf32> to vector<8xf32>
    %83 = vector.shape_cast %82 : vector<8xf32> to vector<8x1xf32>
    %84 = vector.broadcast %83 : vector<8x1xf32> to vector<8x8xf32>
    %85 = arith.divf %81, %84 : vector<8x8xf32>
    %cst_60 = arith.constant dense<0.000000e+00> : vector<8x8xf32>
    %86 = tpu.matmul %85, %71, %cst_60 {dimension_numbers = #tpu.dot_dimension_numbers<[1], [0], [0], [1], [0, 0, 1, 1], [], []>} : vector<8x8xf32>, vector<8x8xf32>, vector<8x8xf32> -> vector<8x8xf32>
    %c16 = arith.constant 16 : index
    %c0_61 = arith.constant 0 : index
    %87 = vector.load %arg5[%c16, %c0_61] : memref<32x32xf32, #tpu.memory_space<vmem>>, vector<8x32xf32>
    %cst_62 = arith.constant dense<0.000000e+00> : vector<8x32xf32>
    %88 = tpu.matmul %86, %87, %cst_62 {dimension_numbers = #tpu.dot_dimension_numbers<[1], [0], [0], [1], [0, 0, 1, 1], [], []>} : vector<8x8xf32>, vector<8x32xf32>, vector<8x32xf32> -> vector<8x32xf32>
    %89 = arith.addf %62, %88 : vector<8x32xf32>
    %c3 = arith.constant 3 : index
    %c0_63 = arith.constant 0 : index
    %c0_64 = arith.constant 0 : index
    %90 = vector.load %arg2[%c3, %c0_63, %c0_64] : memref<4x32x8xf32, #tpu.memory_space<vmem>>, vector<1x32x8xf32>
    %91 = vector.shape_cast %90 : vector<1x32x8xf32> to vector<32x8xf32>
    %cst_65 = arith.constant dense<0.000000e+00> : vector<8x8xf32>
    %92 = tpu.matmul %8, %91, %cst_65 {dimension_numbers = #tpu.dot_dimension_numbers<[1], [0], [0], [1], [0, 0, 1, 1], [], []>} : vector<8x32xf32>, vector<32x8xf32>, vector<8x8xf32> -> vector<8x8xf32>
    %c3_66 = arith.constant 3 : index
    %c0_67 = arith.constant 0 : index
    %c0_68 = arith.constant 0 : index
    %93 = vector.load %arg3[%c3_66, %c0_67, %c0_68] : memref<4x32x8xf32, #tpu.memory_space<vmem>>, vector<1x32x8xf32>
    %94 = vector.shape_cast %93 : vector<1x32x8xf32> to vector<32x8xf32>
    %cst_69 = arith.constant dense<0.000000e+00> : vector<8x8xf32>
    %95 = tpu.matmul %8, %94, %cst_69 {dimension_numbers = #tpu.dot_dimension_numbers<[1], [0], [0], [1], [0, 0, 1, 1], [], []>} : vector<8x32xf32>, vector<32x8xf32>, vector<8x8xf32> -> vector<8x8xf32>
    %c3_70 = arith.constant 3 : index
    %c0_71 = arith.constant 0 : index
    %c0_72 = arith.constant 0 : index
    %96 = vector.load %arg4[%c3_70, %c0_71, %c0_72] : memref<4x32x8xf32, #tpu.memory_space<vmem>>, vector<1x32x8xf32>
    %97 = vector.shape_cast %96 : vector<1x32x8xf32> to vector<32x8xf32>
    %cst_73 = arith.constant dense<0.000000e+00> : vector<8x8xf32>
    %98 = tpu.matmul %8, %97, %cst_73 {dimension_numbers = #tpu.dot_dimension_numbers<[1], [0], [0], [1], [0, 0, 1, 1], [], []>} : vector<8x32xf32>, vector<32x8xf32>, vector<8x8xf32> -> vector<8x8xf32>
    %cst_74 = arith.constant dense<0.000000e+00> : vector<8x8xf32>
    %99 = tpu.matmul %92, %95, %cst_74 {dimension_numbers = #tpu.dot_dimension_numbers<[1], [1], [0], [0], [0, 0, 1, 0], [], []>} : vector<8x8xf32>, vector<8x8xf32>, vector<8x8xf32> -> vector<8x8xf32>
    %cst_75 = arith.constant 0.176776692 : f32
    %100 = vector.broadcast %cst_75 : f32 to vector<8x8xf32>
    %101 = arith.mulf %99, %100 : vector<8x8xf32>
    %cst_76 = arith.constant -1.000000e+30 : f32
    %102 = vector.broadcast %cst_76 : f32 to vector<8x8xf32>
    %103 = arith.select %2, %101, %102 : vector<8x8xi1>, vector<8x8xf32>
    %cst_77 = arith.constant dense<0xFF800000> : vector<8xf32>
    %104 = vector.multi_reduction <maximumf>, %103, %cst_77 [1] : vector<8x8xf32> to vector<8xf32>
    %105 = vector.shape_cast %104 : vector<8xf32> to vector<8x1xf32>
    %106 = vector.broadcast %105 : vector<8x1xf32> to vector<8x8xf32>
    %107 = arith.subf %103, %106 : vector<8x8xf32>
    %108 = math.exp %107 : vector<8x8xf32>
    %cst_78 = arith.constant dense<0.000000e+00> : vector<8xf32>
    %109 = vector.multi_reduction <add>, %108, %cst_78 [1] : vector<8x8xf32> to vector<8xf32>
    %110 = vector.shape_cast %109 : vector<8xf32> to vector<8x1xf32>
    %111 = vector.broadcast %110 : vector<8x1xf32> to vector<8x8xf32>
    %112 = arith.divf %108, %111 : vector<8x8xf32>
    %cst_79 = arith.constant dense<0.000000e+00> : vector<8x8xf32>
    %113 = tpu.matmul %112, %98, %cst_79 {dimension_numbers = #tpu.dot_dimension_numbers<[1], [0], [0], [1], [0, 0, 1, 1], [], []>} : vector<8x8xf32>, vector<8x8xf32>, vector<8x8xf32> -> vector<8x8xf32>
    %c24 = arith.constant 24 : index
    %c0_80 = arith.constant 0 : index
    %114 = vector.load %arg5[%c24, %c0_80] : memref<32x32xf32, #tpu.memory_space<vmem>>, vector<8x32xf32>
    %cst_81 = arith.constant dense<0.000000e+00> : vector<8x32xf32>
    %115 = tpu.matmul %113, %114, %cst_81 {dimension_numbers = #tpu.dot_dimension_numbers<[1], [0], [0], [1], [0, 0, 1, 1], [], []>} : vector<8x8xf32>, vector<8x32xf32>, vector<8x32xf32> -> vector<8x32xf32>
    %116 = arith.addf %89, %115 : vector<8x32xf32>
    %c0_82 = arith.constant 0 : index
    %c0_83 = arith.constant 0 : index
    %c0_84 = arith.constant 0 : index
    %117 = vector.load %arg7[%c0_82, %c0_83, %c0_84] : memref<2x8x32xf32, #tpu.memory_space<vmem>>, vector<1x8x32xf32>
    %118 = vector.shape_cast %117 : vector<1x8x32xf32> to vector<8x32xf32>
    %119 = vector.shape_cast %116 : vector<8x32xf32> to vector<1x8x32xf32>
    tpu.vector_store %arg7[%c0_82, %c0_83, %c0_84], %119 {strides = array<i32>} : memref<2x8x32xf32, #tpu.memory_space<vmem>>, vector<1x8x32xf32>,
    %c1_85 = arith.constant 1 : index
    %c0_86 = arith.constant 0 : index
    %c0_87 = arith.constant 0 : index
    %120 = vector.load %arg1[%c1_85, %c0_86, %c0_87] : memref<2x8x32xf32, #tpu.memory_space<vmem>>, vector<1x8x32xf32>
    %121 = vector.shape_cast %120 : vector<1x8x32xf32> to vector<8x32xf32>
    %c0_88 = arith.constant 0 : index
    %c0_89 = arith.constant 0 : index
    %c0_90 = arith.constant 0 : index
    %122 = vector.load %arg2[%c0_88, %c0_89, %c0_90] : memref<4x32x8xf32, #tpu.memory_space<vmem>>, vector<1x32x8xf32>
    %123 = vector.shape_cast %122 : vector<1x32x8xf32> to vector<32x8xf32>
    %cst_91 = arith.constant dense<0.000000e+00> : vector<8x8xf32>
    %124 = tpu.matmul %121, %123, %cst_91 {dimension_numbers = #tpu.dot_dimension_numbers<[1], [0], [0], [1], [0, 0, 1, 1], [], []>} : vector<8x32xf32>, vector<32x8xf32>, vector<8x8xf32> -> vector<8x8xf32>
    %c0_92 = arith.constant 0 : index
    %c0_93 = arith.constant 0 : index
    %c0_94 = arith.constant 0 : index
    %125 = vector.load %arg3[%c0_92, %c0_93, %c0_94] : memref<4x32x8xf32, #tpu.memory_space<vmem>>, vector<1x32x8xf32>
    %126 = vector.shape_cast %125 : vector<1x32x8xf32> to vector<32x8xf32>
    %cst_95 = arith.constant dense<0.000000e+00> : vector<8x8xf32>
    %127 = tpu.matmul %121, %126, %cst_95 {dimension_numbers = #tpu.dot_dimension_numbers<[1], [0], [0], [1], [0, 0, 1, 1], [], []>} : vector<8x32xf32>, vector<32x8xf32>, vector<8x8xf32> -> vector<8x8xf32>
    %c0_96 = arith.constant 0 : index
    %c0_97 = arith.constant 0 : index
    %c0_98 = arith.constant 0 : index
    %128 = vector.load %arg4[%c0_96, %c0_97, %c0_98] : memref<4x32x8xf32, #tpu.memory_space<vmem>>, vector<1x32x8xf32>
    %129 = vector.shape_cast %128 : vector<1x32x8xf32> to vector<32x8xf32>
    %cst_99 = arith.constant dense<0.000000e+00> : vector<8x8xf32>
    %130 = tpu.matmul %121, %129, %cst_99 {dimension_numbers = #tpu.dot_dimension_numbers<[1], [0], [0], [1], [0, 0, 1, 1], [], []>} : vector<8x32xf32>, vector<32x8xf32>, vector<8x8xf32> -> vector<8x8xf32>
    %cst_100 = arith.constant dense<0.000000e+00> : vector<8x8xf32>
    %131 = tpu.matmul %124, %127, %cst_100 {dimension_numbers = #tpu.dot_dimension_numbers<[1], [1], [0], [0], [0, 0, 1, 0], [], []>} : vector<8x8xf32>, vector<8x8xf32>, vector<8x8xf32> -> vector<8x8xf32>
    %cst_101 = arith.constant 0.176776692 : f32
    %132 = vector.broadcast %cst_101 : f32 to vector<8x8xf32>
    %133 = arith.mulf %131, %132 : vector<8x8xf32>
    %cst_102 = arith.constant -1.000000e+30 : f32
    %134 = vector.broadcast %cst_102 : f32 to vector<8x8xf32>
    %135 = arith.select %2, %133, %134 : vector<8x8xi1>, vector<8x8xf32>
    %cst_103 = arith.constant dense<0xFF800000> : vector<8xf32>
    %136 = vector.multi_reduction <maximumf>, %135, %cst_103 [1] : vector<8x8xf32> to vector<8xf32>
    %137 = vector.shape_cast %136 : vector<8xf32> to vector<8x1xf32>
    %138 = vector.broadcast %137 : vector<8x1xf32> to vector<8x8xf32>
    %139 = arith.subf %135, %138 : vector<8x8xf32>
    %140 = math.exp %139 : vector<8x8xf32>
    %cst_104 = arith.constant dense<0.000000e+00> : vector<8xf32>
    %141 = vector.multi_reduction <add>, %140, %cst_104 [1] : vector<8x8xf32> to vector<8xf32>
    %142 = vector.shape_cast %141 : vector<8xf32> to vector<8x1xf32>
    %143 = vector.broadcast %142 : vector<8x1xf32> to vector<8x8xf32>
    %144 = arith.divf %140, %143 : vector<8x8xf32>
    %cst_105 = arith.constant dense<0.000000e+00> : vector<8x8xf32>
    %145 = tpu.matmul %144, %130, %cst_105 {dimension_numbers = #tpu.dot_dimension_numbers<[1], [0], [0], [1], [0, 0, 1, 1], [], []>} : vector<8x8xf32>, vector<8x8xf32>, vector<8x8xf32> -> vector<8x8xf32>
    %c0_106 = arith.constant 0 : index
    %c0_107 = arith.constant 0 : index
    %146 = vector.load %arg5[%c0_106, %c0_107] : memref<32x32xf32, #tpu.memory_space<vmem>>, vector<8x32xf32>
    %cst_108 = arith.constant dense<0.000000e+00> : vector<8x32xf32>
    %147 = tpu.matmul %145, %146, %cst_108 {dimension_numbers = #tpu.dot_dimension_numbers<[1], [0], [0], [1], [0, 0, 1, 1], [], []>} : vector<8x8xf32>, vector<8x32xf32>, vector<8x32xf32> -> vector<8x32xf32>
    %148 = arith.addf %6, %147 : vector<8x32xf32>
    %c1_109 = arith.constant 1 : index
    %c0_110 = arith.constant 0 : index
    %c0_111 = arith.constant 0 : index
    %149 = vector.load %arg2[%c1_109, %c0_110, %c0_111] : memref<4x32x8xf32, #tpu.memory_space<vmem>>, vector<1x32x8xf32>
    %150 = vector.shape_cast %149 : vector<1x32x8xf32> to vector<32x8xf32>
    %cst_112 = arith.constant dense<0.000000e+00> : vector<8x8xf32>
    %151 = tpu.matmul %121, %150, %cst_112 {dimension_numbers = #tpu.dot_dimension_numbers<[1], [0], [0], [1], [0, 0, 1, 1], [], []>} : vector<8x32xf32>, vector<32x8xf32>, vector<8x8xf32> -> vector<8x8xf32>
    %c1_113 = arith.constant 1 : index
    %c0_114 = arith.constant 0 : index
    %c0_115 = arith.constant 0 : index
    %152 = vector.load %arg3[%c1_113, %c0_114, %c0_115] : memref<4x32x8xf32, #tpu.memory_space<vmem>>, vector<1x32x8xf32>
    %153 = vector.shape_cast %152 : vector<1x32x8xf32> to vector<32x8xf32>
    %cst_116 = arith.constant dense<0.000000e+00> : vector<8x8xf32>
    %154 = tpu.matmul %121, %153, %cst_116 {dimension_numbers = #tpu.dot_dimension_numbers<[1], [0], [0], [1], [0, 0, 1, 1], [], []>} : vector<8x32xf32>, vector<32x8xf32>, vector<8x8xf32> -> vector<8x8xf32>
    %c1_117 = arith.constant 1 : index
    %c0_118 = arith.constant 0 : index
    %c0_119 = arith.constant 0 : index
    %155 = vector.load %arg4[%c1_117, %c0_118, %c0_119] : memref<4x32x8xf32, #tpu.memory_space<vmem>>, vector<1x32x8xf32>
    %156 = vector.shape_cast %155 : vector<1x32x8xf32> to vector<32x8xf32>
    %cst_120 = arith.constant dense<0.000000e+00> : vector<8x8xf32>
    %157 = tpu.matmul %121, %156, %cst_120 {dimension_numbers = #tpu.dot_dimension_numbers<[1], [0], [0], [1], [0, 0, 1, 1], [], []>} : vector<8x32xf32>, vector<32x8xf32>, vector<8x8xf32> -> vector<8x8xf32>
    %cst_121 = arith.constant dense<0.000000e+00> : vector<8x8xf32>
    %158 = tpu.matmul %151, %154, %cst_121 {dimension_numbers = #tpu.dot_dimension_numbers<[1], [1], [0], [0], [0, 0, 1, 0], [], []>} : vector<8x8xf32>, vector<8x8xf32>, vector<8x8xf32> -> vector<8x8xf32>
    %cst_122 = arith.constant 0.176776692 : f32
    %159 = vector.broadcast %cst_122 : f32 to vector<8x8xf32>
    %160 = arith.mulf %158, %159 : vector<8x8xf32>
    %cst_123 = arith.constant -1.000000e+30 : f32
    %161 = vector.broadcast %cst_123 : f32 to vector<8x8xf32>
    %162 = arith.select %2, %160, %161 : vector<8x8xi1>, vector<8x8xf32>
    %cst_124 = arith.constant dense<0xFF800000> : vector<8xf32>
    %163 = vector.multi_reduction <maximumf>, %162, %cst_124 [1] : vector<8x8xf32> to vector<8xf32>
    %164 = vector.shape_cast %163 : vector<8xf32> to vector<8x1xf32>
    %165 = vector.broadcast %164 : vector<8x1xf32> to vector<8x8xf32>
    %166 = arith.subf %162, %165 : vector<8x8xf32>
    %167 = math.exp %166 : vector<8x8xf32>
    %cst_125 = arith.constant dense<0.000000e+00> : vector<8xf32>
    %168 = vector.multi_reduction <add>, %167, %cst_125 [1] : vector<8x8xf32> to vector<8xf32>
    %169 = vector.shape_cast %168 : vector<8xf32> to vector<8x1xf32>
    %170 = vector.broadcast %169 : vector<8x1xf32> to vector<8x8xf32>
    %171 = arith.divf %167, %170 : vector<8x8xf32>
    %cst_126 = arith.constant dense<0.000000e+00> : vector<8x8xf32>
    %172 = tpu.matmul %171, %157, %cst_126 {dimension_numbers = #tpu.dot_dimension_numbers<[1], [0], [0], [1], [0, 0, 1, 1], [], []>} : vector<8x8xf32>, vector<8x8xf32>, vector<8x8xf32> -> vector<8x8xf32>
    %c8_127 = arith.constant 8 : index
    %c0_128 = arith.constant 0 : index
    %173 = vector.load %arg5[%c8_127, %c0_128] : memref<32x32xf32, #tpu.memory_space<vmem>>, vector<8x32xf32>
    %cst_129 = arith.constant dense<0.000000e+00> : vector<8x32xf32>
    %174 = tpu.matmul %172, %173, %cst_129 {dimension_numbers = #tpu.dot_dimension_numbers<[1], [0], [0], [1], [0, 0, 1, 1], [], []>} : vector<8x8xf32>, vector<8x32xf32>, vector<8x32xf32> -> vector<8x32xf32>
    %175 = arith.addf %148, %174 : vector<8x32xf32>
    %c2_130 = arith.constant 2 : index
    %c0_131 = arith.constant 0 : index
    %c0_132 = arith.constant 0 : index
    %176 = vector.load %arg2[%c2_130, %c0_131, %c0_132] : memref<4x32x8xf32, #tpu.memory_space<vmem>>, vector<1x32x8xf32>
    %177 = vector.shape_cast %176 : vector<1x32x8xf32> to vector<32x8xf32>
    %cst_133 = arith.constant dense<0.000000e+00> : vector<8x8xf32>
    %178 = tpu.matmul %121, %177, %cst_133 {dimension_numbers = #tpu.dot_dimension_numbers<[1], [0], [0], [1], [0, 0, 1, 1], [], []>} : vector<8x32xf32>, vector<32x8xf32>, vector<8x8xf32> -> vector<8x8xf32>
    %c2_134 = arith.constant 2 : index
    %c0_135 = arith.constant 0 : index
    %c0_136 = arith.constant 0 : index
    %179 = vector.load %arg3[%c2_134, %c0_135, %c0_136] : memref<4x32x8xf32, #tpu.memory_space<vmem>>, vector<1x32x8xf32>
    %180 = vector.shape_cast %179 : vector<1x32x8xf32> to vector<32x8xf32>
    %cst_137 = arith.constant dense<0.000000e+00> : vector<8x8xf32>
    %181 = tpu.matmul %121, %180, %cst_137 {dimension_numbers = #tpu.dot_dimension_numbers<[1], [0], [0], [1], [0, 0, 1, 1], [], []>} : vector<8x32xf32>, vector<32x8xf32>, vector<8x8xf32> -> vector<8x8xf32>
    %c2_138 = arith.constant 2 : index
    %c0_139 = arith.constant 0 : index
    %c0_140 = arith.constant 0 : index
    %182 = vector.load %arg4[%c2_138, %c0_139, %c0_140] : memref<4x32x8xf32, #tpu.memory_space<vmem>>, vector<1x32x8xf32>
    %183 = vector.shape_cast %182 : vector<1x32x8xf32> to vector<32x8xf32>
    %cst_141 = arith.constant dense<0.000000e+00> : vector<8x8xf32>
    %184 = tpu.matmul %121, %183, %cst_141 {dimension_numbers = #tpu.dot_dimension_numbers<[1], [0], [0], [1], [0, 0, 1, 1], [], []>} : vector<8x32xf32>, vector<32x8xf32>, vector<8x8xf32> -> vector<8x8xf32>
    %cst_142 = arith.constant dense<0.000000e+00> : vector<8x8xf32>
    %185 = tpu.matmul %178, %181, %cst_142 {dimension_numbers = #tpu.dot_dimension_numbers<[1], [1], [0], [0], [0, 0, 1, 0], [], []>} : vector<8x8xf32>, vector<8x8xf32>, vector<8x8xf32> -> vector<8x8xf32>
    %cst_143 = arith.constant 0.176776692 : f32
    %186 = vector.broadcast %cst_143 : f32 to vector<8x8xf32>
    %187 = arith.mulf %185, %186 : vector<8x8xf32>
    %cst_144 = arith.constant -1.000000e+30 : f32
    %188 = vector.broadcast %cst_144 : f32 to vector<8x8xf32>
    %189 = arith.select %2, %187, %188 : vector<8x8xi1>, vector<8x8xf32>
    %cst_145 = arith.constant dense<0xFF800000> : vector<8xf32>
    %190 = vector.multi_reduction <maximumf>, %189, %cst_145 [1] : vector<8x8xf32> to vector<8xf32>
    %191 = vector.shape_cast %190 : vector<8xf32> to vector<8x1xf32>
    %192 = vector.broadcast %191 : vector<8x1xf32> to vector<8x8xf32>
    %193 = arith.subf %189, %192 : vector<8x8xf32>
    %194 = math.exp %193 : vector<8x8xf32>
    %cst_146 = arith.constant dense<0.000000e+00> : vector<8xf32>
    %195 = vector.multi_reduction <add>, %194, %cst_146 [1] : vector<8x8xf32> to vector<8xf32>
    %196 = vector.shape_cast %195 : vector<8xf32> to vector<8x1xf32>
    %197 = vector.broadcast %196 : vector<8x1xf32> to vector<8x8xf32>
    %198 = arith.divf %194, %197 : vector<8x8xf32>
    %cst_147 = arith.constant dense<0.000000e+00> : vector<8x8xf32>
    %199 = tpu.matmul %198, %184, %cst_147 {dimension_numbers = #tpu.dot_dimension_numbers<[1], [0], [0], [1], [0, 0, 1, 1], [], []>} : vector<8x8xf32>, vector<8x8xf32>, vector<8x8xf32> -> vector<8x8xf32>
    %c16_148 = arith.constant 16 : index
    %c0_149 = arith.constant 0 : index
    %200 = vector.load %arg5[%c16_148, %c0_149] : memref<32x32xf32, #tpu.memory_space<vmem>>, vector<8x32xf32>
    %cst_150 = arith.constant dense<0.000000e+00> : vector<8x32xf32>
    %201 = tpu.matmul %199, %200, %cst_150 {dimension_numbers = #tpu.dot_dimension_numbers<[1], [0], [0], [1], [0, 0, 1, 1], [], []>} : vector<8x8xf32>, vector<8x32xf32>, vector<8x32xf32> -> vector<8x32xf32>
    %202 = arith.addf %175, %201 : vector<8x32xf32>
    %c3_151 = arith.constant 3 : index
    %c0_152 = arith.constant 0 : index
    %c0_153 = arith.constant 0 : index
    %203 = vector.load %arg2[%c3_151, %c0_152, %c0_153] : memref<4x32x8xf32, #tpu.memory_space<vmem>>, vector<1x32x8xf32>
    %204 = vector.shape_cast %203 : vector<1x32x8xf32> to vector<32x8xf32>
    %cst_154 = arith.constant dense<0.000000e+00> : vector<8x8xf32>
    %205 = tpu.matmul %121, %204, %cst_154 {dimension_numbers = #tpu.dot_dimension_numbers<[1], [0], [0], [1], [0, 0, 1, 1], [], []>} : vector<8x32xf32>, vector<32x8xf32>, vector<8x8xf32> -> vector<8x8xf32>
    %c3_155 = arith.constant 3 : index
    %c0_156 = arith.constant 0 : index
    %c0_157 = arith.constant 0 : index
    %206 = vector.load %arg3[%c3_155, %c0_156, %c0_157] : memref<4x32x8xf32, #tpu.memory_space<vmem>>, vector<1x32x8xf32>
    %207 = vector.shape_cast %206 : vector<1x32x8xf32> to vector<32x8xf32>
    %cst_158 = arith.constant dense<0.000000e+00> : vector<8x8xf32>
    %208 = tpu.matmul %121, %207, %cst_158 {dimension_numbers = #tpu.dot_dimension_numbers<[1], [0], [0], [1], [0, 0, 1, 1], [], []>} : vector<8x32xf32>, vector<32x8xf32>, vector<8x8xf32> -> vector<8x8xf32>
    %c3_159 = arith.constant 3 : index
    %c0_160 = arith.constant 0 : index
    %c0_161 = arith.constant 0 : index
    %209 = vector.load %arg4[%c3_159, %c0_160, %c0_161] : memref<4x32x8xf32, #tpu.memory_space<vmem>>, vector<1x32x8xf32>
    %210 = vector.shape_cast %209 : vector<1x32x8xf32> to vector<32x8xf32>
    %cst_162 = arith.constant dense<0.000000e+00> : vector<8x8xf32>
    %211 = tpu.matmul %121, %210, %cst_162 {dimension_numbers = #tpu.dot_dimension_numbers<[1], [0], [0], [1], [0, 0, 1, 1], [], []>} : vector<8x32xf32>, vector<32x8xf32>, vector<8x8xf32> -> vector<8x8xf32>
    %cst_163 = arith.constant dense<0.000000e+00> : vector<8x8xf32>
    %212 = tpu.matmul %205, %208, %cst_163 {dimension_numbers = #tpu.dot_dimension_numbers<[1], [1], [0], [0], [0, 0, 1, 0], [], []>} : vector<8x8xf32>, vector<8x8xf32>, vector<8x8xf32> -> vector<8x8xf32>
    %cst_164 = arith.constant 0.176776692 : f32
    %213 = vector.broadcast %cst_164 : f32 to vector<8x8xf32>
    %214 = arith.mulf %212, %213 : vector<8x8xf32>
    %cst_165 = arith.constant -1.000000e+30 : f32
    %215 = vector.broadcast %cst_165 : f32 to vector<8x8xf32>
    %216 = arith.select %2, %214, %215 : vector<8x8xi1>, vector<8x8xf32>
    %cst_166 = arith.constant dense<0xFF800000> : vector<8xf32>
    %217 = vector.multi_reduction <maximumf>, %216, %cst_166 [1] : vector<8x8xf32> to vector<8xf32>
    %218 = vector.shape_cast %217 : vector<8xf32> to vector<8x1xf32>
    %219 = vector.broadcast %218 : vector<8x1xf32> to vector<8x8xf32>
    %220 = arith.subf %216, %219 : vector<8x8xf32>
    %221 = math.exp %220 : vector<8x8xf32>
    %cst_167 = arith.constant dense<0.000000e+00> : vector<8xf32>
    %222 = vector.multi_reduction <add>, %221, %cst_167 [1] : vector<8x8xf32> to vector<8xf32>
    %223 = vector.shape_cast %222 : vector<8xf32> to vector<8x1xf32>
    %224 = vector.broadcast %223 : vector<8x1xf32> to vector<8x8xf32>
    %225 = arith.divf %221, %224 : vector<8x8xf32>
    %cst_168 = arith.constant dense<0.000000e+00> : vector<8x8xf32>
    %226 = tpu.matmul %225, %211, %cst_168 {dimension_numbers = #tpu.dot_dimension_numbers<[1], [0], [0], [1], [0, 0, 1, 1], [], []>} : vector<8x8xf32>, vector<8x8xf32>, vector<8x8xf32> -> vector<8x8xf32>
    %c24_169 = arith.constant 24 : index
    %c0_170 = arith.constant 0 : index
    %227 = vector.load %arg5[%c24_169, %c0_170] : memref<32x32xf32, #tpu.memory_space<vmem>>, vector<8x32xf32>
    %cst_171 = arith.constant dense<0.000000e+00> : vector<8x32xf32>
    %228 = tpu.matmul %226, %227, %cst_171 {dimension_numbers = #tpu.dot_dimension_numbers<[1], [0], [0], [1], [0, 0, 1, 1], [], []>} : vector<8x8xf32>, vector<8x32xf32>, vector<8x32xf32> -> vector<8x32xf32>
    %229 = arith.addf %202, %228 : vector<8x32xf32>
    %c1_172 = arith.constant 1 : index
    %c0_173 = arith.constant 0 : index
    %c0_174 = arith.constant 0 : index
    %230 = vector.load %arg7[%c1_172, %c0_173, %c0_174] : memref<2x8x32xf32, #tpu.memory_space<vmem>>, vector<1x8x32xf32>
    %231 = vector.shape_cast %230 : vector<1x8x32xf32> to vector<8x32xf32>
    %232 = vector.shape_cast %229 : vector<8x32xf32> to vector<1x8x32xf32>
    tpu.vector_store %arg7[%c1_172, %c0_173, %c0_174], %232 {strides = array<i32>} : memref<2x8x32xf32, #tpu.memory_space<vmem>>, vector<1x8x32xf32>,
    return
  }
  func.func @transform_0(%arg0: i32) -> (i32, i32, i32) {
    %c0_i32 = arith.constant 0 : i32
    %c0_i32_0 = arith.constant 0 : i32
    %c0_i32_1 = arith.constant 0 : i32
    %c0_i32_2 = arith.constant 0 : i32
    return %c0_i32, %c0_i32_0, %c0_i32_1 : i32, i32, i32
  }
  func.func @transform_1(%arg0: i32) -> (i32, i32, i32) {
    %c0_i32 = arith.constant 0 : i32
    %c0_i32_0 = arith.constant 0 : i32
    %c0_i32_1 = arith.constant 0 : i32
    %c0_i32_2 = arith.constant 0 : i32
    return %c0_i32, %c0_i32_0, %c0_i32_1 : i32, i32, i32
  }
  func.func @transform_2(%arg0: i32) -> (i32, i32, i32) {
    %c0_i32 = arith.constant 0 : i32
    %c0_i32_0 = arith.constant 0 : i32
    %c0_i32_1 = arith.constant 0 : i32
    %c0_i32_2 = arith.constant 0 : i32
    return %c0_i32, %c0_i32_0, %c0_i32_1 : i32, i32, i32
  }
  func.func @transform_3(%arg0: i32) -> (i32, i32, i32) {
    %c0_i32 = arith.constant 0 : i32
    %c0_i32_0 = arith.constant 0 : i32
    %c0_i32_1 = arith.constant 0 : i32
    %c0_i32_2 = arith.constant 0 : i32
    return %c0_i32, %c0_i32_0, %c0_i32_1 : i32, i32, i32
  }
  func.func @transform_4(%arg0: i32) -> (i32, i32) {
    %c0_i32 = arith.constant 0 : i32
    %c0_i32_0 = arith.constant 0 : i32
    %c0_i32_1 = arith.constant 0 : i32
    return %c0_i32, %c0_i32_0 : i32, i32
  }
  func.func @transform_5(%arg0: i32) -> (i32, i32) {
    %c0_i32 = arith.constant 0 : i32
    %c0_i32_0 = arith.constant 0 : i32
    %c0_i32_1 = arith.constant 0 : i32
    return %c0_i32, %c0_i32_0 : i32, i32
  }
  func.func @transform_6(%arg0: i32) -> (i32, i32, i32) {
    %c0_i32 = arith.constant 0 : i32
    %c0_i32_0 = arith.constant 0 : i32
    %c0_i32_1 = arith.constant 0 : i32
    %c0_i32_2 = arith.constant 0 : i32
    return %c0_i32, %c0_i32_0, %c0_i32_1 : i32, i32, i32
  }
}

</mosaic_0001>

<bundles_post_ra>
// kernel: tpu_custom_call.1
= control target key start
LH: loop header
LB: loop body
LE: loop exit
PB: predicated region body
PF: predicated region fallthrough
CT: control target
= control target key end

     0   :  { %v5271_v2 = vmov 0.0   ;;  %s5262_s0 = inlined_call_operand.vmem [shape: f32[2,8,32], index: 0, kind: input, shape index: {}]   ;;  %s5263_s1 = inlined_call_operand.vmem [shape: f32[4,32,8], index: 1, kind: input, shape index: {}]   ;;  %s5264_s2 = inlined_call_operand.vmem [shape: f32[4,32,8], index: 2, kind: input, shape index: {}]   ;;  %s5265_s3 = inlined_call_operand.vmem [shape: f32[4,32,8], index: 3, kind: input, shape index: {}]   ;;  %s5266_s4 = inlined_call_operand.vmem [shape: f32[32,32], index: 4, kind: input, shape index: {}]   ;;  %s5267_s5 = inlined_call_operand.vmem [shape: f32[1,32], index: 5, kind: input, shape index: {}]   ;;  %s5268_s6 = inlined_call_operand.hbm [shape: f32[2,8,32], index: 6, kind: output, shape index: {}]  }
   0x1   :  { %v4532_v0 = vld [vmem:[%s5264_s2 + $0x18] sm:$0xff]  ;;  %4057 = vmatprep.subr.mxu1 %v5271_v2  ;;  %4046 = vmatprep.subr.mxu0 %v5271_v2  ;;  %v4544_v3 = vld [vmem:[%s5264_s2 + $0x10] sm:$0xff]  ;;  %v4558_v5 = vld [vmem:[%s5264_s2 + $0x8] sm:$0xff] }
   0x2   :  { %v4537_v1 = vld [vmem:[%s5263_s1 + $0x18] sm:$0xff]  ;;  %v4549_v4 = vld [vmem:[%s5263_s1 + $0x10] sm:$0xff]  ;;  %4058 = vmatpush3.msra.mxu1 %v4532_v0  ;;  %v4563_v6 = vld [vmem:[%s5263_s1 + $0x8] sm:$0xff] }
   0x3   :  { %4047 = vmatpush3.msra.mxu0 %v4537_v1  ;;  %4059 = vmatprep.subr.mxu1 %v5271_v2 }
   0x4   :  { %4048 = vmatprep.subr.mxu0 %v5271_v2 }
   0x5   :  { %11 = vsyncpa [#allocation3], 0  ;;  %4060 = vmatpush3.msra.mxu1 %v4544_v3  ;;  %4049 = vmatpush3.msra.mxu0 %v4549_v4  ;;  %v4572_v7 = vld [vmem:[%s5264_s2] sm:$0xff]  ;;  %vm42_vm0 = vcmask 261120   ;;  %vm4490_vm1 = vmmov 0   ;;  %vm264_vm2 = vcmask 64512   ;;  %v24_v18 = vlaneseq }
   0x6   :  { %4061 = vmatprep.subr.mxu1 %v5271_v2  ;;  %4050 = vmatprep.subr.mxu0 %v5271_v2  ;;  %v4579_v8 = vld [vmem:[%s5263_s1] sm:$0xff]  ;;  %v4612_v14 = vld [vmem:[%s5265_s3 + $0x18] sm:$0xff]  ;;  %v4617_v15 = vld [vmem:[%s5265_s3 + $0x10] sm:$0xff] }
   0x7   :  { %4062 = vmatpush3.msra.mxu1 %v4558_v5  ;;  %4051 = vmatpush3.msra.mxu0 %v4563_v6  ;;  %v4586_v9 = vld [vmem:[%s5262_s0] sm:$0xff]  ;;  %v4624_v16 = vld [vmem:[%s5265_s3 + $0x8] sm:$0xff]  ;;  %v25_v19 = vshrl.u32 %v24_v18, 7  ;;  %v27_v20 = vand.u32 127, %v24_v18  ;;  %v4663_v38 = vld [vmem:[%s5263_s1 + $0x38] sm:$0xff] }
   0x8   :  { %4063 = vmatprep.subr.mxu1 %v5271_v2  ;;  %4052 = vmatprep.subr.mxu0 %v5271_v2  ;;  %v4631_v17 = vld [vmem:[%s5265_s3] sm:$0xff]  ;;  %v4670_v39 = vld [vmem:[%s5263_s1 + $0x30] sm:$0xff]  ;;  %v4677_v40 = vld [vmem:[%s5263_s1 + $0x28] sm:$0xff] }
   0x9   :  { %4064 = vmatpush3.msra.mxu1 %v4572_v7  ;;  %4065 = vmatprep.mubr.msk.f32.mxu1 %vm4490_vm1, %v5271_v2  ;;  %vm4641_vm3 = vcmp.le.s32.totalorder %v27_v20, %v25_v19  ;;  %v4653_v34 = vld [vmem:[%s5266_s4] sm:$0xff]  ;;  %v4695_v42 = vld [vmem:[%s5264_s2 + $0x38] sm:$0xff]  ;;  %v4701_v44 = vld [vmem:[%s5264_s2 + $0x30] sm:$0xff] }
   0xa   :  { %4053 = vmatpush3.msra.mxu0 %v4579_v8  ;;  %4054 = vmatprep.mubr.msk.f32.mxu0 %vm4490_vm1, %v5271_v2  ;;  %v4684_v41 = vld [vmem:[%s5263_s1 + $0x20] sm:$0xff]  ;;  %v4710_v46 = vld [vmem:[%s5264_s2 + $0x28] sm:$0xff]  ;;  %v4737_v54 = vld [vmem:[%s5265_s3 + $0x38] sm:$0xff] }
   0xb   :  { %4066 = vmatmul.mubr.msk.f32.vlgmr.msra.gmra.mxu1 %vm42_vm0, %v4586_v9  ;;  %4055 = vmatmul.mubr.msk.f32.vlgmr.msra.gmra.mxu0 %vm42_vm0, %v4586_v9  ;;  %v4717_v47 = vld [vmem:[%s5264_s2 + $0x20] sm:$0xff]  ;;  %v4742_v55 = vld [vmem:[%s5265_s3 + $0x30] sm:$0xff]  ;;  %v4749_v56 = vld [vmem:[%s5265_s3 + $0x28] sm:$0xff] }
   0xc   :  { %4079 = vmatprep.subr.mxu1 %v5271_v2  ;;  %4081 = vmatprep.mubr.msk.f32.mxu1 %vm4490_vm1, %v5271_v2  ;;  %v4756_v57 = vld [vmem:[%s5265_s3 + $0x20] sm:$0xff]  ;;  %v4774_v20 = vld [vmem:[%s5266_s4 + $0x8] sm:$0xff] }
   0xd   :  { %4068 = vmatprep.subr.mxu0 %v5271_v2  ;;  %4076 = vmatprep.mubr.msk.f32.mxu0 %vm4490_vm1, %v5271_v2 }
   0xe   :  { %4069 = vmatpush3.msra.mxu0 %v4612_v14 }
   0xf   :  { %4070 = vmatprep.subr.mxu0 %v5271_v2 }
  0x10   :  { %4071 = vmatpush3.msra.mxu0 %v4617_v15 }
  0x11   :  { %4072 = vmatprep.subr.mxu0 %v5271_v2 }
  0x12   :  { %4073 = vmatpush3.msra.mxu0 %v4624_v16 }
  0x13   :  { %4074 = vmatprep.subr.mxu0 %v5271_v2 }
  0x14   :  { %4075 = vmatpush3.msra.mxu0 %v4631_v17 }
  0x15   :  { %4077 = vmatmul.mubr.msk.f32.vlgmr.msra.gmra.mxu0 %vm42_vm0, %v4586_v9  ;;  %4089 = vmatprep.subr.mxu0 %v5271_v2 }
  0x16   :  { %4091 = vmatprep.mubr.msk.f32.mxu0 %vm4490_vm1, %v5271_v2  ;;  %4090 = vmatpush3.msra.mxu0 %v4653_v34 }
  0x17   :  { %4105 = vmatprep.subr.mxu0 %v5271_v2 }
  0xcb   :  { %v186_v10 = vpop.f32.mrf.mxu1  ;;  %v112_v11 = vpop.f32.mrf.mxu0 }
  0xcc   :  { %4080 = vmatpush3.xpose.msk.msra.mxu1 %vm264_vm2, %v186_v10 }
  0xcd   :  { %v4067_v12 = vpop.f32.mrf.mxu1  ;;  %v4056_v13 = vpop.f32.mrf.mxu0  ;;  %4084 = vmatprep.subr.mxu1 %v5271_v2 }
  0xcf   :  { %4082 = vmatmul.mubr.msk.f32.vlgmr.msra.gmra.mxu1 %vm264_vm2, %v112_v11 }
  0xd0   :  { %4086 = vmatprep.mubr.msk.f32.mxu1 %vm4490_vm1, %v5271_v2 }
  0xd5   :  { %v260_v32 = vpop.f32.mrf.mxu0 }
  0xd6   :  { %4085 = vmatpush3.msra.mxu1 %v260_v32 }
  0xd7   :  { %v4078_v33 = vpop.f32.mrf.mxu0  ;;  %4094 = vmatprep.subr.mxu1 %v5271_v2 }
  0xd8   :  { %v4831_v33 = vld [vmem:[%s5264_s2 + $0x48] sm:$0xff] }
 0x18f   :  { %v337_v21 = vpop.f32.mrf.mxu1 }
 0x190   :  { %v341_v23 = vmul.f32 0.17677669, %v337_v21 }
 0x191   :  { %v4083_v24 = vpop.f32.mrf.mxu1 }
 0x192   :  { %v342_v25 = vsel %vm4641_vm3, %v341_v23, -1e+30 }
 0x193   :  { %v343_v26 = vsel %vm264_vm2, %v342_v25, -inf }
 0x194   :  { %344 = vmax.xlane.f32.xlu0 %v343_v26  ;;  %v4791_v26 = vld [vmem:[%s5263_s1 + $0x50] sm:$0xff] }
 0x21d   :  { %v345_v27 = vpop.xlane.xlu0 %344 }
 0x21e   :  { %v346_v28 = vsub.f32 %v342_v25, %v345_v27  ;;  %v4784_v25 = vld [vmem:[%s5263_s1 + $0x58] sm:$0xff]  ;;  %v4798_v27 = vld [vmem:[%s5263_s1 + $0x48] sm:$0xff] }
 0x220   :  { %v347_v29 = vmul.f32 1.442695, %v346_v28  ;;  %v4805_v28 = vld [vmem:[%s5263_s1 + $0x40] sm:$0xff] }
 0x222   :  { %4435 = vpow2.f32 %v347_v29  ;;  %v4816_v29 = vld [vmem:[%s5264_s2 + $0x58] sm:$0xff] }
 0x22f   :  { %v4436_v30 = vpop.eup %4435 }
 0x230   :  { %v349_v31 = vsel %vm264_vm2, %v4436_v30, 0.0 }
 0x231   :  { %350 = vadd.xlane.f32.xlu0 %v349_v31  ;;  %v4822_v31 = vld [vmem:[%s5264_s2 + $0x50] sm:$0xff] }
 0x2ba   :  { %v351_v35 = vpop.xlane.xlu0 %350 }
 0x2bb   :  { %4437 = vrcp.f32 %v351_v35  ;;  %v4838_v35 = vld [vmem:[%s5264_s2 + $0x40] sm:$0xff] }
 0x2c8   :  { %v4438_v36 = vpop.eup %4437 }
 0x2c9   :  { %v353_v37 = vmul.f32 %v4438_v36, %v4436_v30 }
 0x2cb   :  { %4087 = vmatmul.mubr.msk.f32.vlgmr.msra.gmra.mxu1 %vm264_vm2, %v353_v37 }
 0x2cc   :  { %4102 = vmatprep.mubr.msk.f32.mxu1 %vm4490_vm1, %v5271_v2  ;;  %4095 = vmatpush3.msra.mxu1 %v4663_v38 }
 0x2cd   :  { %4096 = vmatprep.subr.mxu1 %v5271_v2 }
 0x2ce   :  { %4097 = vmatpush3.msra.mxu1 %v4670_v39 }
 0x2cf   :  { %4098 = vmatprep.subr.mxu1 %v5271_v2 }
 0x2d0   :  { %4099 = vmatpush3.msra.mxu1 %v4677_v40 }
 0x2d1   :  { %4100 = vmatprep.subr.mxu1 %v5271_v2 }
 0x2d2   :  { %4101 = vmatpush3.msra.mxu1 %v4684_v41 }
 0x2d3   :  { %4103 = vmatmul.mubr.msk.f32.vlgmr.msra.gmra.mxu1 %vm42_vm0, %v4586_v9  ;;  %4116 = vmatprep.subr.mxu1 %v5271_v2 }
 0x2d4   :  { %4124 = vmatprep.mubr.msk.f32.mxu1 %vm4490_vm1, %v5271_v2  ;;  %4117 = vmatpush3.msra.mxu1 %v4737_v54 }
 0x2d5   :  { %4118 = vmatprep.subr.mxu1 %v5271_v2 }
 0x2d6   :  { %4119 = vmatpush3.msra.mxu1 %v4742_v55 }
 0x2d7   :  { %4120 = vmatprep.subr.mxu1 %v5271_v2 }
 0x2d8   :  { %4121 = vmatpush3.msra.mxu1 %v4749_v56 }
 0x2d9   :  { %4122 = vmatprep.subr.mxu1 %v5271_v2 }
 0x2da   :  { %4123 = vmatpush3.msra.mxu1 %v4756_v57 }
 0x2db   :  { %4125 = vmatmul.mubr.msk.f32.vlgmr.msra.gmra.mxu1 %vm42_vm0, %v4586_v9  ;;  %4137 = vmatprep.subr.mxu1 %v5271_v2 }
 0x2dc   :  { %4139 = vmatprep.mubr.msk.f32.mxu1 %vm4490_vm1, %v5271_v2  ;;  %4138 = vmatpush3.msra.mxu1 %v4774_v20 }
 0x2dd   :  { %4153 = vmatprep.subr.mxu1 %v5271_v2 }
 0x38b   :  { %v423_v43 = vpop.f32.mrf.mxu1 }
 0x38c   :  { %4092 = vmatmul.mubr.msk.f32.vlgmr.msra.gmra.mxu0 %vm264_vm2, %v423_v43  ;;  %v4851_v43 = vld [vmem:[%s5267_s5] ss:$0 sm:$0xff] }
 0x38d   :  { %4106 = vmatpush3.msra.mxu0 %v4695_v42  ;;  %v4088_v45 = vpop.f32.mrf.mxu1  ;;  %4113 = vmatprep.mubr.msk.f32.mxu0 %vm4490_vm1, %v5271_v2 }
 0x38e   :  { %4107 = vmatprep.subr.mxu0 %v5271_v2 }
 0x38f   :  { %4108 = vmatpush3.msra.mxu0 %v4701_v44 }
 0x390   :  { %4109 = vmatprep.subr.mxu0 %v5271_v2 }
 0x391   :  { %4110 = vmatpush3.msra.mxu0 %v4710_v46 }
 0x392   :  { %4111 = vmatprep.subr.mxu0 %v5271_v2 }
 0x393   :  { %4112 = vmatpush3.msra.mxu0 %v4717_v47  ;;  %v573_v48 = vpop.f32.mrf.mxu1 }
 0x394   :  { %4114 = vmatmul.mubr.msk.f32.vlgmr.msra.gmra.mxu0 %vm42_vm0, %v4586_v9  ;;  %4127 = vmatprep.subr.mxu0 %v5271_v2 }
 0x395   :  { %4129 = vmatprep.mubr.msk.f32.mxu0 %vm4490_vm1, %v5271_v2  ;;  %v4104_v49 = vpop.f32.mrf.mxu1 }
 0x39b   :  { %v723_v18 = vpop.f32.mrf.mxu1 }
 0x39d   :  { %v4126_v19 = vpop.f32.mrf.mxu1 }
 0x44c   :  { %v4727_v50 = vpop.f32.mrf.mxu0 }
 0x44d   :  { %v501_v45 = vadd.f32 %v4851_v43, %v4727_v50  ;;  %v4870_v50 = vld [vmem:[%s5265_s3 + $0x50] sm:$0xff] }
 0x44e   :  { %v4093_v51 = vpop.f32.mrf.mxu0 }
 0x454   :  { %v648_v52 = vpop.f32.mrf.mxu0 }
 0x455   :  { %4128 = vmatpush3.xpose.msk.msra.mxu0 %vm264_vm2, %v648_v52 }
 0x456   :  { %v4115_v53 = vpop.f32.mrf.mxu0  ;;  %4132 = vmatprep.subr.mxu0 %v5271_v2 }
 0x458   :  { %4130 = vmatmul.mubr.msk.f32.vlgmr.msra.gmra.mxu0 %vm264_vm2, %v573_v48 }
 0x459   :  { %4134 = vmatprep.mubr.msk.f32.mxu0 %vm4490_vm1, %v5271_v2  ;;  %4133 = vmatpush3.msra.mxu0 %v723_v18 }
 0x45a   :  { %4142 = vmatprep.subr.mxu0 %v5271_v2 }
 0x518   :  { %v799_v58 = vpop.f32.mrf.mxu0 }
 0x519   :  { %v803_v59 = vmul.f32 0.17677669, %v799_v58  ;;  %v4865_v58 = vld [vmem:[%s5265_s3 + $0x58] sm:$0xff] }
 0x51a   :  { %v4131_v60 = vpop.f32.mrf.mxu0 }
 0x51b   :  { %v804_v61 = vsel %vm4641_vm3, %v803_v59, -1e+30  ;;  %v4877_v59 = vld [vmem:[%s5265_s3 + $0x48] sm:$0xff]  ;;  %v4884_v60 = vld [vmem:[%s5265_s3 + $0x40] sm:$0xff] }
 0x51c   :  { %v805_v62 = vsel %vm264_vm2, %v804_v61, -inf }
 0x51d   :  { %806 = vmax.xlane.f32.xlu1 %v805_v62 }
 0x5a6   :  { %v807_v63 = vpop.xlane.xlu1 %806 }
 0x5a7   :  { %v808_v10 = vsub.f32 %v804_v61, %v807_v63 }
 0x5a9   :  { %v809_v11 = vmul.f32 1.442695, %v808_v10 }
 0x5ab   :  { %4439 = vpow2.f32 %v809_v11 }
 0x5b8   :  { %v4440_v12 = vpop.eup %4439 }
 0x5b9   :  { %v811_v13 = vsel %vm264_vm2, %v4440_v12, 0.0 }
 0x5ba   :  { %812 = vadd.xlane.f32.xlu1 %v811_v13 }
 0x643   :  { %v813_v21 = vpop.xlane.xlu1 %812 }
 0x644   :  { %4441 = vrcp.f32 %v813_v21 }
 0x651   :  { %v4442_v23 = vpop.eup %4441 }
 0x652   :  { %v815_v24 = vmul.f32 %v4442_v23, %v4440_v12 }
 0x654   :  { %4135 = vmatmul.mubr.msk.f32.vlgmr.msra.gmra.mxu0 %vm264_vm2, %v815_v24 }
 0x655   :  { %4150 = vmatprep.mubr.msk.f32.mxu0 %vm4490_vm1, %v5271_v2  ;;  %4143 = vmatpush3.msra.mxu0 %v4784_v25 }
 0x656   :  { %4144 = vmatprep.subr.mxu0 %v5271_v2 }
 0x657   :  { %4145 = vmatpush3.msra.mxu0 %v4791_v26 }
 0x658   :  { %4146 = vmatprep.subr.mxu0 %v5271_v2 }
 0x659   :  { %4147 = vmatpush3.msra.mxu0 %v4798_v27 }
 0x65a   :  { %4148 = vmatprep.subr.mxu0 %v5271_v2 }
 0x65b   :  { %4149 = vmatpush3.msra.mxu0 %v4805_v28 }
 0x65c   :  { %4151 = vmatmul.mubr.msk.f32.vlgmr.msra.gmra.mxu0 %vm42_vm0, %v4586_v9  ;;  %4164 = vmatprep.subr.mxu0 %v5271_v2 }
 0x65d   :  { %4172 = vmatprep.mubr.msk.f32.mxu0 %vm4490_vm1, %v5271_v2  ;;  %4165 = vmatpush3.msra.mxu0 %v4865_v58 }
 0x65e   :  { %4166 = vmatprep.subr.mxu0 %v5271_v2 }
 0x65f   :  { %4167 = vmatpush3.msra.mxu0 %v4870_v50 }
 0x660   :  { %4168 = vmatprep.subr.mxu0 %v5271_v2 }
 0x661   :  { %4169 = vmatpush3.msra.mxu0 %v4877_v59 }
 0x662   :  { %4170 = vmatprep.subr.mxu0 %v5271_v2 }
 0x663   :  { %4171 = vmatpush3.msra.mxu0 %v4884_v60 }
 0x664   :  { %4173 = vmatmul.mubr.msk.f32.vlgmr.msra.gmra.mxu0 %vm42_vm0, %v4586_v9  ;;  %4185 = vmatprep.subr.mxu0 %v5271_v2 }
 0x665   :  { %4187 = vmatprep.mubr.msk.f32.mxu0 %vm4490_vm1, %v5271_v2 }
 0x714   :  { %v885_v30 = vpop.f32.mrf.mxu0 }
 0x715   :  { %4140 = vmatmul.mubr.msk.f32.vlgmr.msra.gmra.mxu1 %vm264_vm2, %v885_v30  ;;  %v4902_v30 = vld [vmem:[%s5266_s4 + $0x10] sm:$0xff] }
 0x716   :  { %4154 = vmatpush3.msra.mxu1 %v4816_v29  ;;  %v4136_v32 = vpop.f32.mrf.mxu0  ;;  %4161 = vmatprep.mubr.msk.f32.mxu1 %vm4490_vm1, %v5271_v2 }
 0x717   :  { %4155 = vmatprep.subr.mxu1 %v5271_v2  ;;  %4186 = vmatpush3.msra.mxu0 %v4902_v30 }
 0x718   :  { %4156 = vmatpush3.msra.mxu1 %v4822_v31  ;;  %4201 = vmatprep.subr.mxu0 %v5271_v2 }
 0x719   :  { %4157 = vmatprep.subr.mxu1 %v5271_v2 }
 0x71a   :  { %4158 = vmatpush3.msra.mxu1 %v4831_v33 }
 0x71b   :  { %4159 = vmatprep.subr.mxu1 %v5271_v2 }
 0x71c   :  { %4160 = vmatpush3.msra.mxu1 %v4838_v35  ;;  %v1035_v36 = vpop.f32.mrf.mxu0 }
 0x71d   :  { %4162 = vmatmul.mubr.msk.f32.vlgmr.msra.gmra.mxu1 %vm42_vm0, %v4586_v9  ;;  %4175 = vmatprep.subr.mxu1 %v5271_v2 }
 0x71e   :  { %4177 = vmatprep.mubr.msk.f32.mxu1 %vm4490_vm1, %v5271_v2  ;;  %v4152_v37 = vpop.f32.mrf.mxu0 }
 0x724   :  { %v1185_v23 = vpop.f32.mrf.mxu0 }
 0x726   :  { %v4174_v24 = vpop.f32.mrf.mxu0 }
 0x7d5   :  { %v959_v48 = vpop.f32.mrf.mxu1 }
 0x7d6   :  { %v4855_v49 = vadd.f32 %v959_v48, %v501_v45  ;;  %v4912_v45 = vld [vmem:[%s5263_s1 + $0x78] sm:$0xff]  ;;  %v4919_v48 = vld [vmem:[%s5263_s1 + $0x70] sm:$0xff] }
 0x7d7   :  { %v4141_v51 = vpop.f32.mrf.mxu1 }
 0x7d8   :  { %v4926_v51 = vld [vmem:[%s5263_s1 + $0x68] sm:$0xff] }
 0x7dd   :  { %v1110_v52 = vpop.f32.mrf.mxu1 }
 0x7de   :  { %4176 = vmatpush3.xpose.msk.msra.mxu1 %vm264_vm2, %v1110_v52  ;;  %v4933_v52 = vld [vmem:[%s5263_s1 + $0x60] sm:$0xff] }
 0x7df   :  { %v4163_v53 = vpop.f32.mrf.mxu1  ;;  %4180 = vmatprep.subr.mxu1 %v5271_v2 }
 0x7e0   :  { %v4944_v53 = vld [vmem:[%s5264_s2 + $0x78] sm:$0xff] }
 0x7e1   :  { %4178 = vmatmul.mubr.msk.f32.vlgmr.msra.gmra.mxu1 %vm264_vm2, %v1035_v36 }
 0x7e2   :  { %4182 = vmatprep.mubr.msk.f32.mxu1 %vm4490_vm1, %v5271_v2  ;;  %4181 = vmatpush3.msra.mxu1 %v1185_v23 }
 0x7e3   :  { %4190 = vmatprep.subr.mxu1 %v5271_v2 }
 0x8a1   :  { %v1261_v61 = vpop.f32.mrf.mxu1 }
 0x8a2   :  { %v1265_v62 = vmul.f32 0.17677669, %v1261_v61 }
 0x8a3   :  { %v4179_v63 = vpop.f32.mrf.mxu1 }
 0x8a4   :  { %v1266_v10 = vsel %vm4641_vm3, %v1265_v62, -1e+30  ;;  %v4950_v62 = vld [vmem:[%s5264_s2 + $0x70] sm:$0xff] }
 0x8a5   :  { %v1267_v11 = vsel %vm264_vm2, %v1266_v10, -inf  ;;  %5276 = vst [vmem:[#allocation5_spill] sm:$0xff] %v4950_v62 }
 0x8a6   :  { %1268 = vmax.xlane.f32.xlu0 %v1267_v11  ;;  %v4966_v11 = vld [vmem:[%s5264_s2 + $0x60] sm:$0xff] }
 0x8a7   :  { %5278 = vst [vmem:[#allocation7_spill] sm:$0xff] %v4966_v11 }
 0x92f   :  { %v1269_v12 = vpop.xlane.xlu0 %1268 }
 0x930   :  { %v1270_v13 = vsub.f32 %v1266_v10, %v1269_v12  ;;  %v4959_v10 = vld [vmem:[%s5264_s2 + $0x68] sm:$0xff] }
 0x931   :  { %5277 = vst [vmem:[#allocation6_spill] sm:$0xff] %v4959_v10 }
 0x932   :  { %v1271_v18 = vmul.f32 1.442695, %v1270_v13 }
 0x934   :  { %4443 = vpow2.f32 %v1271_v18 }
 0x941   :  { %v4444_v19 = vpop.eup %4443 }
 0x942   :  { %v1273_v21 = vsel %vm264_vm2, %v4444_v19, 0.0 }
 0x943   :  { %1274 = vadd.xlane.f32.xlu1 %v1273_v21 }
 0x9cc   :  { %v1275_v32 = vpop.xlane.xlu1 %1274 }
 0x9cd   :  { %4445 = vrcp.f32 %v1275_v32  ;;  %v4987_v32 = vld [vmem:[%s5265_s3 + $0x78] sm:$0xff] }
 0x9da   :  { %v4446_v36 = vpop.eup %4445 }
 0x9db   :  { %v1277_v37 = vmul.f32 %v4446_v36, %v4444_v19  ;;  %v4999_v36 = vld [vmem:[%s5265_s3 + $0x68] sm:$0xff] }
 0x9dd   :  { %4183 = vmatmul.mubr.msk.f32.vlgmr.msra.gmra.mxu1 %vm264_vm2, %v1277_v37  ;;  %v5006_v37 = vld [vmem:[%s5265_s3 + $0x60] sm:$0xff] }
 0x9de   :  { %4198 = vmatprep.mubr.msk.f32.mxu1 %vm4490_vm1, %v5271_v2  ;;  %4191 = vmatpush3.msra.mxu1 %v4912_v45 }
 0x9df   :  { %4192 = vmatprep.subr.mxu1 %v5271_v2 }
 0x9e0   :  { %4193 = vmatpush3.msra.mxu1 %v4919_v48 }
 0x9e1   :  { %4194 = vmatprep.subr.mxu1 %v5271_v2 }
 0x9e2   :  { %4195 = vmatpush3.msra.mxu1 %v4926_v51 }
 0x9e3   :  { %4196 = vmatprep.subr.mxu1 %v5271_v2 }
 0x9e4   :  { %4197 = vmatpush3.msra.mxu1 %v4933_v52 }
 0x9e5   :  { %4199 = vmatmul.mubr.msk.f32.vlgmr.msra.gmra.mxu1 %vm42_vm0, %v4586_v9  ;;  %4212 = vmatprep.subr.mxu1 %v5271_v2 }
 0x9e6   :  { %4220 = vmatprep.mubr.msk.f32.mxu1 %vm4490_vm1, %v5271_v2  ;;  %4213 = vmatpush3.msra.mxu1 %v4987_v32 }
 0x9e7   :  { %4214 = vmatprep.subr.mxu1 %v5271_v2 }
 0xa9d   :  { %v1347_v61 = vpop.f32.mrf.mxu1 }
 0xa9e   :  { %4188 = vmatmul.mubr.msk.f32.vlgmr.msra.gmra.mxu0 %vm264_vm2, %v1347_v61 }
 0xa9f   :  { %4202 = vmatpush3.msra.mxu0 %v4944_v53  ;;  %v4184_v63 = vpop.f32.mrf.mxu1  ;;  %4209 = vmatprep.mubr.msk.f32.mxu0 %vm4490_vm1, %v5271_v2 }
 0xaa0   :  { %4203 = vmatprep.subr.mxu0 %v5271_v2 }
 0xaa1   :  { %4204 = vmatpush3.msra.mxu0 %v4950_v62  ;;  %v5279_v62 = vmov 0.0  }
 0xaa2   :  { %4205 = vmatprep.subr.mxu0 %v5271_v2 }
 0xaa3   :  { %4206 = vmatpush3.msra.mxu0 %v4959_v10 }
 0xaa4   :  { %4207 = vmatprep.subr.mxu0 %v5271_v2 }
 0xaa5   :  { %4208 = vmatpush3.msra.mxu0 %v4966_v11  ;;  %v1497_v12 = vpop.f32.mrf.mxu1 }
 0xaa6   :  { %4210 = vmatmul.mubr.msk.f32.vlgmr.msra.gmra.mxu0 %vm42_vm0, %v4586_v9  ;;  %4223 = vmatprep.subr.mxu0 %v5271_v2 }
 0xaa7   :  { %4225 = vmatprep.mubr.msk.f32.mxu0 %vm4490_vm1, %v5271_v2  ;;  %v4200_v13 = vpop.f32.mrf.mxu1 }
 0xb5e   :  { %v1421_v18 = vpop.f32.mrf.mxu0 }
 0xb5f   :  { %v4977_v19 = vadd.f32 %v1421_v18, %v4855_v49  ;;  %v4992_v49 = vld [vmem:[%s5265_s3 + $0x70] sm:$0xff] }
 0xb60   :  { %v4189_v21 = vpop.f32.mrf.mxu0  ;;  %4215 = vmatpush3.msra.mxu1 %v4992_v49 }
 0xb61   :  { %4216 = vmatprep.subr.mxu1 %v5271_v2 }
 0xb62   :  { %4217 = vmatpush3.msra.mxu1 %v4999_v36 }
 0xb63   :  { %4218 = vmatprep.subr.mxu1 %v5271_v2 }
 0xb64   :  { %4219 = vmatpush3.msra.mxu1 %v5006_v37 }
 0xb65   :  { %4221 = vmatmul.mubr.msk.f32.vlgmr.msra.gmra.mxu1 %vm42_vm0, %v4586_v9  ;;  %4233 = vmatprep.subr.mxu1 %v5271_v2 }
 0xb66   :  { %v1572_v23 = vpop.f32.mrf.mxu0  ;;  %4235 = vmatprep.mubr.msk.f32.mxu1 %vm4490_vm1, %v5271_v2 }
 0xb67   :  { %4224 = vmatpush3.xpose.msk.msra.mxu0 %vm264_vm2, %v1572_v23 }
 0xb68   :  { %v4211_v24 = vpop.f32.mrf.mxu0  ;;  %4228 = vmatprep.subr.mxu0 %v5271_v2 }
 0xb6a   :  { %4226 = vmatmul.mubr.msk.f32.vlgmr.msra.gmra.mxu0 %vm264_vm2, %v1497_v12 }
 0xb6b   :  { %4230 = vmatprep.mubr.msk.f32.mxu0 %vm4490_vm1, %v5271_v2 }
 0xc25   :  { %v1647_v10 = vpop.f32.mrf.mxu1 }
 0xc26   :  { %4229 = vmatpush3.msra.mxu0 %v1647_v10 }
 0xc27   :  { %v4222_v2 = vpop.f32.mrf.mxu1  ;;  %4238 = vmatprep.subr.mxu0 %v5279_v62 }
 0xc2a   :  { %v1723_v61 = vpop.f32.mrf.mxu0 }
 0xc2b   :  { %v1727_v63 = vmul.f32 0.17677669, %v1723_v61  ;;  %v5024_v61 = vld [vmem:[%s5266_s4 + $0x18] sm:$0xff] }
 0xc2c   :  { %v4227_v12 = vpop.f32.mrf.mxu0  ;;  %4234 = vmatpush3.msra.mxu1 %v5024_v61 }
 0xc2d   :  { %v1728_v13 = vsel %vm4641_vm3, %v1727_v63, -1e+30  ;;  %4249 = vmatprep.subr.mxu1 %v5279_v62 }
 0xc2e   :  { %v1729_v18 = vsel %vm264_vm2, %v1728_v13, -inf }
 0xc2f   :  { %1730 = vmax.xlane.f32.xlu0 %v1729_v18 }
 0xcb8   :  { %v1731_v21 = vpop.xlane.xlu0 %1730 }
 0xcb9   :  { %v1732_v23 = vsub.f32 %v1728_v13, %v1731_v21 }
 0xcbb   :  { %v1733_v24 = vmul.f32 1.442695, %v1732_v23 }
 0xcbd   :  { %4447 = vpow2.f32 %v1733_v24 }
 0xcca   :  { %v4448_v11 = vpop.eup %4447 }
 0xccb   :  { %v1735_v9 = vsel %vm264_vm2, %v4448_v11, 0.0 }
 0xccc   :  { %1736 = vadd.xlane.f32.xlu1 %v1735_v9 }
 0xd55   :  { %v1737_v63 = vpop.xlane.xlu1 %1736 }
 0xd56   :  { %4449 = vrcp.f32 %v1737_v63 }
 0xd63   :  { %v4450_v12 = vpop.eup %4449 }
 0xd64   :  { %v1739_v13 = vmul.f32 %v4450_v12, %v4448_v11 }
 0xd66   :  { %4231 = vmatmul.mubr.msk.f32.vlgmr.msra.gmra.mxu0 %vm264_vm2, %v1739_v13 }
 0xd67   :  { %4239 = vmatpush3.msra.mxu0 %v4537_v1  ;;  %4246 = vmatprep.mubr.msk.f32.mxu0 %vm4490_vm1, %v5279_v62  ;;  %v5042_v1 = vld [vmem:[%s5262_s0 + $0x8] sm:$0xff]  ;;  %s4491_s0 = smov [#allocation2]  }
 0xd68   :  { %4240 = vmatprep.subr.mxu0 %v5279_v62  ;;  %s3737_s29 = sshll.u32 %s4491_s0, 4  ;;  %s3738_s29 = int_to_ptr.vmem [resolvable:$true] %s3737_s29 }
 0xd69   :  { %4241 = vmatpush3.msra.mxu0 %v4549_v4  ;;  %s4467_s30 = scalar_lea.vmem %s3738_s29, 256  ;;  %p4472_p1 = scmp.lt.s32.totalorder %s3738_s29, %s3738_s29 }
 0xd6a   :  { %4242 = vmatprep.subr.mxu0 %v5279_v62  ;;  %p4468_p0 = scmp.ne.s32.totalorder %s3738_s29, %s4467_s30  ;;  %p4473_p2 = scmp.lt.s32.totalorder %s4467_s30, %s4467_s30 }
 0xd6b   :  { %4243 = vmatpush3.msra.mxu0 %v4563_v6 }
 0xd6c   :  { %4244 = vmatprep.subr.mxu0 %v5279_v62  ;;  %p4474_p3 = por %p4473_p2, %p4472_p1 }
 0xd6d   :  { %4245 = vmatpush3.msra.mxu0 %v4579_v8 }
 0xd6e   :  { %4260 = vmatprep.subr.mxu0 %v5279_v62  ;;  %4247 = vmatmul.mubr.msk.f32.vlgmr.msra.gmra.mxu0 %vm42_vm0, %v5042_v1  ;;  %p4475_p4 = pnand %p4474_p3, %p4468_p0 }
 0xd6f   :  { %4261 = vmatpush3.msra.mxu0 %v4612_v14  ;;  %4268 = vmatprep.mubr.msk.f32.mxu0 %vm4490_vm1, %v5279_v62 }
 0xd70   :  { %4262 = vmatprep.subr.mxu0 %v5279_v62 }
 0xd71   :  { %4263 = vmatpush3.msra.mxu0 %v4617_v15 }
 0xd72   :  { %4264 = vmatprep.subr.mxu0 %v5279_v62 }
 0xd73   :  { %4265 = vmatpush3.msra.mxu0 %v4624_v16 }
 0xd74   :  { %4266 = vmatprep.subr.mxu0 %v5279_v62 }
 0xd75   :  { %4267 = vmatpush3.msra.mxu0 %v4631_v17 }
 0xd76   :  { %4269 = vmatmul.mubr.msk.f32.vlgmr.msra.gmra.mxu0 %vm42_vm0, %v5042_v1  ;;  %4281 = vmatprep.subr.mxu0 %v5279_v62 }
 0xd77   :  { %4282 = vmatpush3.msra.mxu0 %v4653_v34  ;;  %4283 = vmatprep.mubr.msk.f32.mxu0 %vm4490_vm1, %v5279_v62 }
 0xd78   :  { %4297 = vmatprep.subr.mxu0 %v5279_v62 }
 0xe26   :  { %v1809_v2 = vpop.f32.mrf.mxu0 }
 0xe27   :  { %4236 = vmatmul.mubr.msk.f32.vlgmr.msra.gmra.mxu1 %vm264_vm2, %v1809_v2 }
 0xe28   :  { %4250 = vmatpush3.msra.mxu1 %v4532_v0  ;;  %v4232_v4 = vpop.f32.mrf.mxu0  ;;  %4257 = vmatprep.mubr.msk.f32.mxu1 %vm4490_vm1, %v5279_v62 }
 0xe29   :  { %4251 = vmatprep.subr.mxu1 %v5279_v62 }
 0xe2a   :  { %4252 = vmatpush3.msra.mxu1 %v4544_v3 }
 0xe2b   :  { %4253 = vmatprep.subr.mxu1 %v5279_v62 }
 0xe2c   :  { %4254 = vmatpush3.msra.mxu1 %v4558_v5 }
 0xe2d   :  { %4255 = vmatprep.subr.mxu1 %v5279_v62 }
 0xe2e   :  { %4256 = vmatpush3.msra.mxu1 %v4572_v7  ;;  %v1964_v0 = vpop.f32.mrf.mxu0 }
 0xe2f   :  { %4258 = vmatmul.mubr.msk.f32.vlgmr.msra.gmra.mxu1 %vm42_vm0, %v5042_v1  ;;  %4271 = vmatprep.subr.mxu1 %v5279_v62 }
 0xe30   :  { %4273 = vmatprep.mubr.msk.f32.mxu1 %vm4490_vm1, %v5279_v62  ;;  %v4248_v6 = vpop.f32.mrf.mxu0 }
 0xe36   :  { %v2112_v24 = vpop.f32.mrf.mxu0 }
 0xe38   :  { %v4270_v9 = vpop.f32.mrf.mxu0 }
 0xee7   :  { %v1883_v8 = vpop.f32.mrf.mxu1 }
 0xee8   :  { %v1887_v3 = vadd.f32 %v1883_v8, %v4977_v19 }
 0xee9   :  { %v4237_v14 = vpop.f32.mrf.mxu1 }
 0xeea   :  { %1888 = vst.msk [vmem:[#allocation2] sm:$0xff] %vm42_vm0, %v1887_v3 }
 0xeef   :  { %v2038_v5 = vpop.f32.mrf.mxu1 }
 0xef0   :  { %4272 = vmatpush3.xpose.msk.msra.mxu1 %vm264_vm2, %v2038_v5 }
 0xef1   :  { %v4259_v7 = vpop.f32.mrf.mxu1  ;;  %4276 = vmatprep.subr.mxu1 %v5279_v62 }
 0xef3   :  { %4274 = vmatmul.mubr.msk.f32.vlgmr.msra.gmra.mxu1 %vm264_vm2, %v1964_v0 }
 0xef4   :  { %4278 = vmatprep.mubr.msk.f32.mxu1 %vm4490_vm1, %v5279_v62  ;;  %4277 = vmatpush3.msra.mxu1 %v2112_v24 }
 0xef5   :  { %4286 = vmatprep.subr.mxu1 %v5279_v62 }
 0xfb3   :  { %v2188_v15 = vpop.f32.mrf.mxu1 }
 0xfb4   :  { %v2192_v16 = vmul.f32 0.17677669, %v2188_v15 }
 0xfb5   :  { %v4275_v17 = vpop.f32.mrf.mxu1 }
 0xfb6   :  { %v2193_v34 = vsel %vm4641_vm3, %v2192_v16, -1e+30 }
 0xfb7   :  { %v2194_v10 = vsel %vm264_vm2, %v2193_v34, -inf }
 0xfb8   :  { %2195 = vmax.xlane.f32.xlu0 %v2194_v10 }
0x1041   :  { %v2196_v11 = vpop.xlane.xlu0 %2195 }
0x1042   :  { %v2197_v19 = vsub.f32 %v2193_v34, %v2196_v11 }
0x1044   :  { %v2198_v18 = vmul.f32 1.442695, %v2197_v19 }
0x1046   :  { %4451 = vpow2.f32 %v2198_v18 }
0x1053   :  { %v4452_v21 = vpop.eup %4451 }
0x1054   :  { %v2200_v23 = vsel %vm264_vm2, %v4452_v21, 0.0 }
0x1055   :  { %2201 = vadd.xlane.f32.xlu1 %v2200_v23 }
0x10de   :  { %v2202_v63 = vpop.xlane.xlu1 %2201 }
0x10df   :  { %4453 = vrcp.f32 %v2202_v63 }
0x10ec   :  { %v4454_v12 = vpop.eup %4453 }
0x10ed   :  { %v2204_v13 = vmul.f32 %v4454_v12, %v4452_v21 }
0x10ef   :  { %4279 = vmatmul.mubr.msk.f32.vlgmr.msra.gmra.mxu1 %vm264_vm2, %v2204_v13 }
0x10f0   :  { %4287 = vmatpush3.msra.mxu1 %v4663_v38  ;;  %4294 = vmatprep.mubr.msk.f32.mxu1 %vm4490_vm1, %v5279_v62 }
0x10f1   :  { %4288 = vmatprep.subr.mxu1 %v5279_v62 }
0x10f2   :  { %4289 = vmatpush3.msra.mxu1 %v4670_v39 }
0x10f3   :  { %4290 = vmatprep.subr.mxu1 %v5279_v62 }
0x10f4   :  { %4291 = vmatpush3.msra.mxu1 %v4677_v40 }
0x10f5   :  { %4292 = vmatprep.subr.mxu1 %v5279_v62 }
0x10f6   :  { %4293 = vmatpush3.msra.mxu1 %v4684_v41 }
0x10f7   :  { %4295 = vmatmul.mubr.msk.f32.vlgmr.msra.gmra.mxu1 %vm42_vm0, %v5042_v1  ;;  %4308 = vmatprep.subr.mxu1 %v5279_v62 }
0x10f8   :  { %4309 = vmatpush3.msra.mxu1 %v4737_v54  ;;  %4316 = vmatprep.mubr.msk.f32.mxu1 %vm4490_vm1, %v5279_v62 }
0x10f9   :  { %4310 = vmatprep.subr.mxu1 %v5279_v62 }
0x10fa   :  { %4311 = vmatpush3.msra.mxu1 %v4742_v55 }
0x10fb   :  { %4312 = vmatprep.subr.mxu1 %v5279_v62 }
0x10fc   :  { %4313 = vmatpush3.msra.mxu1 %v4749_v56 }
0x10fd   :  { %4314 = vmatprep.subr.mxu1 %v5279_v62 }
0x10fe   :  { %4315 = vmatpush3.msra.mxu1 %v4756_v57 }
0x10ff   :  { %4317 = vmatmul.mubr.msk.f32.vlgmr.msra.gmra.mxu1 %vm42_vm0, %v5042_v1  ;;  %4329 = vmatprep.subr.mxu1 %v5279_v62 }
0x1100   :  { %4330 = vmatpush3.msra.mxu1 %v4774_v20  ;;  %4331 = vmatprep.mubr.msk.f32.mxu1 %vm4490_vm1, %v5279_v62 }
0x1101   :  { %4345 = vmatprep.subr.mxu1 %v5279_v62 }
0x11af   :  { %v2274_v38 = vpop.f32.mrf.mxu1 }
0x11b0   :  { %4284 = vmatmul.mubr.msk.f32.vlgmr.msra.gmra.mxu0 %vm264_vm2, %v2274_v38 }
0x11b1   :  { %4298 = vmatpush3.msra.mxu0 %v4695_v42  ;;  %v4280_v39 = vpop.f32.mrf.mxu1  ;;  %4305 = vmatprep.mubr.msk.f32.mxu0 %vm4490_vm1, %v5279_v62 }
0x11b2   :  { %4299 = vmatprep.subr.mxu0 %v5279_v62 }
0x11b3   :  { %4300 = vmatpush3.msra.mxu0 %v4701_v44 }
0x11b4   :  { %4301 = vmatprep.subr.mxu0 %v5279_v62 }
0x11b5   :  { %4302 = vmatpush3.msra.mxu0 %v4710_v46 }
0x11b6   :  { %4303 = vmatprep.subr.mxu0 %v5279_v62 }
0x11b7   :  { %4304 = vmatpush3.msra.mxu0 %v4717_v47  ;;  %v2423_v40 = vpop.f32.mrf.mxu1 }
0x11b8   :  { %4306 = vmatmul.mubr.msk.f32.vlgmr.msra.gmra.mxu0 %vm42_vm0, %v5042_v1  ;;  %4319 = vmatprep.subr.mxu0 %v5279_v62 }
0x11b9   :  { %4321 = vmatprep.mubr.msk.f32.mxu0 %vm4490_vm1, %v5279_v62  ;;  %v4296_v41 = vpop.f32.mrf.mxu1 }
0x11bf   :  { %v2571_v3 = vpop.f32.mrf.mxu1 }
0x11c1   :  { %v4318_v14 = vpop.f32.mrf.mxu1 }
0x1270   :  { %v5133_v42 = vpop.f32.mrf.mxu0 }
0x1272   :  { %v4285_v44 = vpop.f32.mrf.mxu0 }
0x1278   :  { %v2497_v54 = vpop.f32.mrf.mxu0 }
0x1279   :  { %4320 = vmatpush3.xpose.msk.msra.mxu0 %vm264_vm2, %v2497_v54 }
0x127a   :  { %v4307_v46 = vpop.f32.mrf.mxu0  ;;  %4324 = vmatprep.subr.mxu0 %v5279_v62 }
0x127c   :  { %4322 = vmatmul.mubr.msk.f32.vlgmr.msra.gmra.mxu0 %vm264_vm2, %v2423_v40 }
0x127d   :  { %4326 = vmatprep.mubr.msk.f32.mxu0 %vm4490_vm1, %v5279_v62  ;;  %4325 = vmatpush3.msra.mxu0 %v2571_v3 }
0x127e   :  { %4334 = vmatprep.subr.mxu0 %v5279_v62 }
0x133c   :  { %v2647_v47 = vpop.f32.mrf.mxu0 }
0x133d   :  { %v2651_v55 = vmul.f32 0.17677669, %v2647_v47 }
0x133e   :  { %v4323_v56 = vpop.f32.mrf.mxu0 }
0x133f   :  { %v2652_v57 = vsel %vm4641_vm3, %v2651_v55, -1e+30 }
0x1340   :  { %v2653_v20 = vsel %vm264_vm2, %v2652_v57, -inf }
0x1341   :  { %2654 = vmax.xlane.f32.xlu0 %v2653_v20 }
0x13ca   :  { %v2655_v2 = vpop.xlane.xlu0 %2654 }
0x13cb   :  { %v2656_v4 = vsub.f32 %v2652_v57, %v2655_v2 }
0x13cd   :  { %v2657_v0 = vmul.f32 1.442695, %v2656_v4 }
0x13cf   :  { %4455 = vpow2.f32 %v2657_v0 }
0x13dc   :  { %v4456_v6 = vpop.eup %4455 }
0x13dd   :  { %v2659_v8 = vsel %vm264_vm2, %v4456_v6, 0.0 }
0x13de   :  { %2660 = vadd.xlane.f32.xlu1 %v2659_v8 }
0x1467   :  { %v2661_v5 = vpop.xlane.xlu1 %2660 }
0x1468   :  { %4457 = vrcp.f32 %v2661_v5 }
0x1475   :  { %v4458_v7 = vpop.eup %4457 }
0x1476   :  { %v2663_v15 = vmul.f32 %v4458_v7, %v4456_v6 }
0x1478   :  { %4327 = vmatmul.mubr.msk.f32.vlgmr.msra.gmra.mxu0 %vm264_vm2, %v2663_v15 }
0x1479   :  { %4335 = vmatpush3.msra.mxu0 %v4784_v25  ;;  %4342 = vmatprep.mubr.msk.f32.mxu0 %vm4490_vm1, %v5279_v62 }
0x147a   :  { %4336 = vmatprep.subr.mxu0 %v5279_v62 }
0x147b   :  { %4337 = vmatpush3.msra.mxu0 %v4791_v26 }
0x147c   :  { %4338 = vmatprep.subr.mxu0 %v5279_v62 }
0x147d   :  { %4339 = vmatpush3.msra.mxu0 %v4798_v27 }
0x147e   :  { %4340 = vmatprep.subr.mxu0 %v5279_v62 }
0x147f   :  { %4341 = vmatpush3.msra.mxu0 %v4805_v28 }
0x1480   :  { %4343 = vmatmul.mubr.msk.f32.vlgmr.msra.gmra.mxu0 %vm42_vm0, %v5042_v1  ;;  %4356 = vmatprep.subr.mxu0 %v5279_v62 }
0x1481   :  { %4357 = vmatpush3.msra.mxu0 %v4865_v58  ;;  %4364 = vmatprep.mubr.msk.f32.mxu0 %vm4490_vm1, %v5279_v62 }
0x1482   :  { %4358 = vmatprep.subr.mxu0 %v5279_v62 }
0x1483   :  { %4359 = vmatpush3.msra.mxu0 %v4870_v50 }
0x1484   :  { %4360 = vmatprep.subr.mxu0 %v5279_v62 }
0x1485   :  { %4361 = vmatpush3.msra.mxu0 %v4877_v59 }
0x1486   :  { %4362 = vmatprep.subr.mxu0 %v5279_v62 }
0x1487   :  { %4363 = vmatpush3.msra.mxu0 %v4884_v60 }
0x1488   :  { %4365 = vmatmul.mubr.msk.f32.vlgmr.msra.gmra.mxu0 %vm42_vm0, %v5042_v1  ;;  %4377 = vmatprep.subr.mxu0 %v5279_v62 }
0x1489   :  { %4378 = vmatpush3.msra.mxu0 %v4902_v30  ;;  %4379 = vmatprep.mubr.msk.f32.mxu0 %vm4490_vm1, %v5279_v62 }
0x148a   :  { %4393 = vmatprep.subr.mxu0 %v5279_v62 }
0x1538   :  { %v2733_v25 = vpop.f32.mrf.mxu0 }
0x1539   :  { %4332 = vmatmul.mubr.msk.f32.vlgmr.msra.gmra.mxu1 %vm264_vm2, %v2733_v25 }
0x153a   :  { %4346 = vmatpush3.msra.mxu1 %v4816_v29  ;;  %v4328_v26 = vpop.f32.mrf.mxu0  ;;  %4353 = vmatprep.mubr.msk.f32.mxu1 %vm4490_vm1, %v5279_v62  ;;  %v2352_v29 = vadd.f32 %v4851_v43, %v5133_v42 }
0x153b   :  { %4347 = vmatprep.subr.mxu1 %v5279_v62 }
0x153c   :  { %4348 = vmatpush3.msra.mxu1 %v4822_v31 }
0x153d   :  { %4349 = vmatprep.subr.mxu1 %v5279_v62 }
0x153e   :  { %4350 = vmatpush3.msra.mxu1 %v4831_v33 }
0x153f   :  { %4351 = vmatprep.subr.mxu1 %v5279_v62 }
0x1540   :  { %4352 = vmatpush3.msra.mxu1 %v4838_v35  ;;  %v2882_v27 = vpop.f32.mrf.mxu0 }
0x1541   :  { %4354 = vmatmul.mubr.msk.f32.vlgmr.msra.gmra.mxu1 %vm42_vm0, %v5042_v1  ;;  %4367 = vmatprep.subr.mxu1 %v5279_v62 }
0x1542   :  { %4369 = vmatprep.mubr.msk.f32.mxu1 %vm4490_vm1, %v5279_v62  ;;  %v4344_v28 = vpop.f32.mrf.mxu0 }
0x1548   :  { %v3030_v18 = vpop.f32.mrf.mxu0 }
0x154a   :  { %v4366_v21 = vpop.f32.mrf.mxu0 }
0x15f9   :  { %v2807_v31 = vpop.f32.mrf.mxu1 }
0x15fa   :  { %v5191_v58 = vadd.f32 %v2807_v31, %v2352_v29 }
0x15fb   :  { %v4333_v33 = vpop.f32.mrf.mxu1 }
0x1601   :  { %v2956_v50 = vpop.f32.mrf.mxu1 }
0x1602   :  { %4368 = vmatpush3.xpose.msk.msra.mxu1 %vm264_vm2, %v2956_v50 }
0x1603   :  { %v4355_v35 = vpop.f32.mrf.mxu1  ;;  %4372 = vmatprep.subr.mxu1 %v5279_v62 }
0x1605   :  { %4370 = vmatmul.mubr.msk.f32.vlgmr.msra.gmra.mxu1 %vm264_vm2, %v2882_v27 }
0x1606   :  { %4374 = vmatprep.mubr.msk.f32.mxu1 %vm4490_vm1, %v5279_v62  ;;  %4373 = vmatpush3.msra.mxu1 %v3030_v18 }
0x1607   :  { %4382 = vmatprep.subr.mxu1 %v5279_v62 }
0x16c5   :  { %v3106_v59 = vpop.f32.mrf.mxu1 }
0x16c6   :  { %v3110_v60 = vmul.f32 0.17677669, %v3106_v59 }
0x16c7   :  { %v4371_v30 = vpop.f32.mrf.mxu1 }
0x16c8   :  { %v3111_v43 = vsel %vm4641_vm3, %v3110_v60, -1e+30 }
0x16c9   :  { %v3112_v16 = vsel %vm264_vm2, %v3111_v43, -inf }
0x16ca   :  { %3113 = vmax.xlane.f32.xlu0 %v3112_v16 }
0x1753   :  { %v3114_v17 = vpop.xlane.xlu0 %3113 }
0x1754   :  { %v3115_v34 = vsub.f32 %v3111_v43, %v3114_v17 }
0x1756   :  { %v3116_v10 = vmul.f32 1.442695, %v3115_v34 }
0x1758   :  { %4459 = vpow2.f32 %v3116_v10 }
0x1765   :  { %v4460_v11 = vpop.eup %4459 }
0x1766   :  { %v3118_v19 = vsel %vm264_vm2, %v4460_v11, 0.0 }
0x1767   :  { %3119 = vadd.xlane.f32.xlu1 %v3118_v19 }
0x17f0   :  { %v3120_v23 = vpop.xlane.xlu1 %3119 }
0x17f1   :  { %4461 = vrcp.f32 %v3120_v23 }
0x17fe   :  { %v4462_v24 = vpop.eup %4461 }
0x17ff   :  { %v3122_v9 = vmul.f32 %v4462_v24, %v4460_v11 }
0x1801   :  { %4375 = vmatmul.mubr.msk.f32.vlgmr.msra.gmra.mxu1 %vm264_vm2, %v3122_v9 }
0x1802   :  { %4383 = vmatpush3.msra.mxu1 %v4912_v45  ;;  %4390 = vmatprep.mubr.msk.f32.mxu1 %vm4490_vm1, %v5279_v62 }
0x1803   :  { %4384 = vmatprep.subr.mxu1 %v5279_v62 }
0x1804   :  { %4385 = vmatpush3.msra.mxu1 %v4919_v48 }
0x1805   :  { %4386 = vmatprep.subr.mxu1 %v5279_v62 }
0x1806   :  { %4387 = vmatpush3.msra.mxu1 %v4926_v51  ;;  %v5280_v51 = vld [vmem:[#allocation5_spill] sm:$0xff] }
0x1807   :  { %4388 = vmatprep.subr.mxu1 %v5279_v62 }
0x1808   :  { %4389 = vmatpush3.msra.mxu1 %v4933_v52  ;;  %v5281_v52 = vld [vmem:[#allocation6_spill] sm:$0xff] }
0x1809   :  { %4391 = vmatmul.mubr.msk.f32.vlgmr.msra.gmra.mxu1 %vm42_vm0, %v5042_v1  ;;  %4404 = vmatprep.subr.mxu1 %v5279_v62 }
0x180a   :  { %4405 = vmatpush3.msra.mxu1 %v4987_v32  ;;  %4412 = vmatprep.mubr.msk.f32.mxu1 %vm4490_vm1, %v5279_v62  ;;  %v5282_v32 = vld [vmem:[#allocation7_spill] sm:$0xff] }
0x180b   :  { %4406 = vmatprep.subr.mxu1 %v5279_v62 }
0x180c   :  { %4407 = vmatpush3.msra.mxu1 %v4992_v49 }
0x180d   :  { %4408 = vmatprep.subr.mxu1 %v5279_v62 }
0x180e   :  { %4409 = vmatpush3.msra.mxu1 %v4999_v36 }
0x180f   :  { %4410 = vmatprep.subr.mxu1 %v5279_v62 }
0x1810   :  { %4411 = vmatpush3.msra.mxu1 %v5006_v37 }
0x1811   :  { %4413 = vmatmul.mubr.msk.f32.vlgmr.msra.gmra.mxu1 %vm42_vm0, %v5042_v1  ;;  %4425 = vmatprep.subr.mxu1 %v5279_v62 }
0x1812   :  { %4426 = vmatpush3.msra.mxu1 %v5024_v61  ;;  %4427 = vmatprep.mubr.msk.f32.mxu1 %vm4490_vm1, %v5279_v62 }
0x18c1   :  { %v3192_v45 = vpop.f32.mrf.mxu1 }
0x18c2   :  { %4380 = vmatmul.mubr.msk.f32.vlgmr.msra.gmra.mxu0 %vm264_vm2, %v3192_v45 }
0x18c3   :  { %4394 = vmatpush3.msra.mxu0 %v4944_v53  ;;  %v4376_v48 = vpop.f32.mrf.mxu1  ;;  %4401 = vmatprep.mubr.msk.f32.mxu0 %vm4490_vm1, %v5279_v62 }
0x18c4   :  { %4395 = vmatprep.subr.mxu0 %v5279_v62 }
0x18c5   :  { %4396 = vmatpush3.msra.mxu0 %v5280_v51 }
0x18c6   :  { %4397 = vmatprep.subr.mxu0 %v5279_v62 }
0x18c7   :  { %4398 = vmatpush3.msra.mxu0 %v5281_v52 }
0x18c8   :  { %4399 = vmatprep.subr.mxu0 %v5279_v62 }
0x18c9   :  { %4400 = vmatpush3.msra.mxu0 %v5282_v32  ;;  %v3341_v53 = vpop.f32.mrf.mxu1 }
0x18ca   :  { %4402 = vmatmul.mubr.msk.f32.vlgmr.msra.gmra.mxu0 %vm42_vm0, %v5042_v1  ;;  %4415 = vmatprep.subr.mxu0 %v5279_v62 }
0x18cb   :  { %4417 = vmatprep.mubr.msk.f32.mxu0 %vm4490_vm1, %v5279_v62  ;;  %v4392_v49 = vpop.f32.mrf.mxu1 }
0x18d1   :  { %v3489_v47 = vpop.f32.mrf.mxu1 }
0x1982   :  { %v3266_v36 = vpop.f32.mrf.mxu0 }
0x1983   :  { %v3270_v37 = vadd.f32 %v3266_v36, %v5191_v58 }
0x1984   :  { %v4381_v61 = vpop.f32.mrf.mxu0 }
0x198a   :  { %v3415_v63 = vpop.f32.mrf.mxu0 }
0x198b   :  { %4416 = vmatpush3.xpose.msk.msra.mxu0 %vm264_vm2, %v3415_v63 }
0x198c   :  { %v4403_v12 = vpop.f32.mrf.mxu0  ;;  %4420 = vmatprep.subr.mxu0 %v5279_v62 }
0x198e   :  { %4418 = vmatmul.mubr.msk.f32.vlgmr.msra.gmra.mxu0 %vm264_vm2, %v3341_v53 }
0x198f   :  { %4422 = vmatprep.mubr.msk.f32.mxu0 %vm4490_vm1, %v5279_v62  ;;  %4421 = vmatpush3.msra.mxu0 %v3489_v47  ;;  %v4414_v62 = vpop.f32.mrf.mxu1 }
0x1a4e   :  { %v3565_v1 = vpop.f32.mrf.mxu0 }
0x1a4f   :  { %v3569_v13 = vmul.f32 0.17677669, %v3565_v1 }
0x1a50   :  { %v4419_v38 = vpop.f32.mrf.mxu0 }
0x1a51   :  { %v3570_v39 = vsel %vm4641_vm3, %v3569_v13, -1e+30 }
0x1a52   :  { %v3571_v40 = vsel %vm264_vm2, %v3570_v39, -inf }
0x1a53   :  { %3572 = vmax.xlane.f32.xlu0 %v3571_v40 }
0x1adc   :  { %v3573_v41 = vpop.xlane.xlu0 %3572 }
0x1add   :  { %v3574_v42 = vsub.f32 %v3570_v39, %v3573_v41 }
0x1adf   :  { %v3575_v44 = vmul.f32 1.442695, %v3574_v42 }
0x1ae1   :  { %4463 = vpow2.f32 %v3575_v44 }
0x1aee   :  { %v4464_v54 = vpop.eup %4463 }
0x1aef   :  { %v3577_v46 = vsel %vm264_vm2, %v4464_v54, 0.0 }
0x1af0   :  { %3578 = vadd.xlane.f32.xlu1 %v3577_v46 }
0x1b79   :  { %v3579_v55 = vpop.xlane.xlu1 %3578 }
0x1b7a   :  { %4465 = vrcp.f32 %v3579_v55 }
0x1b87   :  { %v4466_v56 = vpop.eup %4465 }
0x1b88   :  { %v3581_v57 = vmul.f32 %v4466_v56, %v4464_v54 }
0x1b8a   :  { %4423 = vmatmul.mubr.msk.f32.vlgmr.msra.gmra.mxu0 %vm264_vm2, %v3581_v57 }
0x1c4a   :  { %v3651_v22 = vpop.f32.mrf.mxu0 }
0x1c4b   :  { %4428 = vmatmul.mubr.msk.f32.vlgmr.msra.gmra.mxu1 %vm264_vm2, %v3651_v22 }
0x1c4c   :  { %v4424_v20 = vpop.f32.mrf.mxu0 }
0x1d0b   :  { %v3725_v2 = vpop.f32.mrf.mxu1 }
0x1d0c   :  { %v3729_v4 = vadd.f32 %v3725_v2, %v3270_v37 }
0x1d0d   :  { %v4429_v0 = vpop.f32.mrf.mxu1 }
0x1d0e   :  { %3731 = vst.msk [vmem:[#allocation2 + $0x8] sm:$0xff] %vm42_vm0, %v3729_v4 }
0x1d0f   :  { %4478 = shalt.err (!%p4475_p4)
}
0x1d10   :  { %s4492_s7 = smov 128   ;;  %s4493_s8 = smov 8  }
0x1d11   :  { %3743 = dma.vmem_to_hbm [thread:$0]  %s3738_s29, 256, %s5268_s6, [#allocation3], %s4492_s7, %s4492_s7, %s4493_s8  }
0x1d12   :  { %4487 = dma.done.wait [#allocation3], 256  }
0x1d13   :  { %4488 = vsyncadd [#allocation3], 4294967040 }
0x1d14   :  { %3747 = vsyncpa [#allocation3], 1 }

</bundles_post_ra>
